<compile_context>
chip_gen: v6e
topology: v6e:2x2x1
jax: 0.10.0
libtpu: 0.0.40
codegen_flags: <defaults>
</compile_context>

<pallas_src>
import functools

import jax
import jax.numpy as jnp
from jax.experimental import pallas as pl
from jax.experimental.pallas import tpu as pltpu


def _round_up(x, m):
    return (x + m - 1) // m * m


def _pad_last(a, target):
    pad = target - a.shape[-1]
    if pad == 0:
        return a
    cfg = [(0, 0)] * (a.ndim - 1) + [(0, pad)]
    return jnp.pad(a, cfg)


# ----------------------------------------------------------------------------
# Fused kernel: conv-as-matmul (3 taps, fused im2col) + bias + ReLU
#               + global average pool + projector MLP
# ----------------------------------------------------------------------------
def clblock_kernel(xcat_ref, wc_ref, bc_ref, w1_ref, b1_ref, w2_ref, b2_ref,
                   h_ref, proj_ref, *, bb, hh, ww):
    # xcat_ref : (bb, (H+2)*W, 3*Cin)  column-shifted padded input rows
    # wc_ref   : (3, 3*Cin, CP)        conv weight grouped by kernel row dh
    # bc_ref   : (1, CP)               conv bias (lane-padded)
    # w1/b1    : (CP, HP), (1, HP)     projector layer 1
    # w2/b2    : (HP, PP), (1, PP)     projector layer 2
    # h_ref    : (1, bb, CP)           pooled encoder features
    # proj_ref : (1, bb, PP)           projector output
    P = hh * ww
    inv_p = 1.0 / float(P)
    CP = wc_ref.shape[-1]

    x = xcat_ref[...]                                  # (bb, (H+2)*W, 3*Cin)

    # Conv as 3 batched MXU matmuls (one per kernel row dh).  Each tap is a
    # contiguous (bb*P, 3*Cin) slab thanks to the wrapper-side lane packing.
    acc = jnp.zeros((bb * P, CP), jnp.float32)
    for dh in range(3):
        patch = x[:, dh * ww:dh * ww + P, :].reshape(bb * P, -1)
        acc = acc + jnp.dot(patch, wc_ref[dh],
                            preferred_element_type=jnp.float32)

    y = jnp.maximum(acc + bc_ref[...], 0.0)            # bias + ReLU, (bb*P, CP)

    # Global average pool over all H*W pixels -> (bb, CP), lane-dense.
    h = jnp.sum(y.reshape(bb, P, CP), axis=1) * inv_p
    h_ref[0] = h.astype(h_ref.dtype)
    # NOTE: the "skips" feature map is intentionally NOT written out
    # (ClBlock.return_three == False discards it).

    # Projector MLP fused into the epilogue: Linear -> ReLU -> Linear.
    z = jnp.dot(h, w1_ref[...], preferred_element_type=jnp.float32) + b1_ref[...]
    z = jnp.maximum(z, 0.0)
    proj = jnp.dot(z, w2_ref[...], preferred_element_type=jnp.float32) + b2_ref[...]
    proj_ref[0] = proj.astype(proj_ref.dtype)


# ----------------------------------------------------------------------------
# ClBlock.forward equivalent
# ----------------------------------------------------------------------------
@jax.jit
def cl_block_forward(pic_set, conv_w, conv_b, w1, b1, w2, b2):
    # pic_set: (N, BS, C_in, H, W)  (PyTorch NCHW per image)
    N, BS, Cin, H, W = pic_set.shape
    B = N * BS
    C_enc = conv_w.shape[1]
    hidden = w1.shape[1]
    proj_dim = w2.shape[1]
    CP = _round_up(C_enc, 128)
    HP = _round_up(hidden, 128)
    PP = _round_up(proj_dim, 128)

    # ---- layout plumbing (no FLOPs): NCHW -> NHWC, SAME zero pad, and the 3
    # column-shifted views packed on the lane axis so each conv-kernel row dh
    # becomes one contiguous (H*W, 3*Cin) slab inside the kernel (3x input
    # bytes in HBM instead of a 9x im2col).
    x = jnp.transpose(pic_set.reshape(B, Cin, H, W), (0, 2, 3, 1))
    xp = jnp.pad(x, ((0, 0), (1, 1), (1, 1), (0, 0)))            # (B, H+2, W+2, Cin)
    xcat = jnp.concatenate([xp[:, :, dw:dw + W, :] for dw in range(3)], axis=-1)
    xcat = xcat.reshape(B, (H + 2) * W, 3 * Cin)                 # (B, (H+2)*W, 3*Cin)

    # ---- zero-pad parameters to lane-dense (multiple-of-128) widths; exact math.
    wc = _pad_last(conv_w.reshape(3, 3 * Cin, C_enc), CP)        # (3, 3*Cin, CP)
    bc = _pad_last(conv_b, CP)                                   # (1, CP)
    w1p = _pad_last(jnp.pad(w1, ((0, CP - C_enc), (0, 0))), HP)  # (CP, HP)
    b1p = _pad_last(b1, HP)                                      # (1, HP)
    w2p = _pad_last(jnp.pad(w2, ((0, HP - hidden), (0, 0))), PP) # (HP, PP)
    b2p = _pad_last(b2, PP)                                      # (1, PP)

    # Few, fat grid steps; at least 2 blocks when possible so v7x's 2 TCs both
    # get work, but keep the per-block activation comfortably inside VMEM.
    nblk = 2 if (B % 2 == 0 and B >= 2) else 1
    bb = B // nblk
    while bb > 1 and bb % 2 == 0 and bb * (H * W) * CP * 4 > (8 << 20):
        nblk *= 2
        bb //= 2

    kernel = functools.partial(clblock_kernel, bb=bb, hh=H, ww=W)
    h_pad, proj_pad = pl.pallas_call(
        kernel,
        out_shape=(jax.ShapeDtypeStruct((nblk, bb, CP), jnp.float32),
                   jax.ShapeDtypeStruct((nblk, bb, PP), jnp.float32)),
        grid=(nblk,),
        in_specs=[
            pl.BlockSpec((bb, (H + 2) * W, 3 * Cin), lambda b: (b, 0, 0)),
            pl.BlockSpec((3, 3 * Cin, CP), lambda b: (0, 0, 0)),
            pl.BlockSpec((1, CP), lambda b: (0, 0)),
            pl.BlockSpec((CP, HP), lambda b: (0, 0)),
            pl.BlockSpec((1, HP), lambda b: (0, 0)),
            pl.BlockSpec((HP, PP), lambda b: (0, 0)),
            pl.BlockSpec((1, PP), lambda b: (0, 0)),
        ],
        out_specs=(pl.BlockSpec((1, bb, CP), lambda b: (b, 0, 0)),
                   pl.BlockSpec((1, bb, PP), lambda b: (b, 0, 0))),
        compiler_params=pltpu.CompilerParams(
            dimension_semantics=("parallel",)),
    )(xcat, wc, bc, w1p, b1p, w2p, b2p)

    h = h_pad.reshape(B, CP)[:, :C_enc].reshape(N, BS, C_enc)
    proj = proj_pad.reshape(B, PP)[:, :proj_dim].reshape(N, BS, proj_dim)
    return h, proj                                   # return_three=False


# ----------------------------------------------------------------------------
# Pure-JAX reference (for correctness check)
# ----------------------------------------------------------------------------
def _im2col_3x3(x_nhwc):
    B, H, W, C = x_nhwc.shape
    xp = jnp.pad(x_nhwc, ((0, 0), (1, 1), (1, 1), (0, 0)))
    cols = []
    for dh in range(3):
        for dw in range(3):
            cols.append(xp[:, dh:dh + H, dw:dw + W, :])
    patches = jnp.stack(cols, axis=3)                # (B, H, W, 9, C)
    return patches.reshape(B, H * W, 9 * C)


def reference_forward(pic_set, conv_w, conv_b, w1, b1, w2, b2):
    N, BS, Cin, H, W = pic_set.shape
    x = jnp.transpose(pic_set.reshape(N * BS, Cin, H, W), (0, 2, 3, 1))
    patches = _im2col_3x3(x)
    feat = jnp.maximum(patches @ conv_w + conv_b, 0.0)
    h = feat.mean(axis=1)
    proj = jnp.maximum(h @ w1 + b1, 0.0) @ w2 + b2
    return h.reshape(N, BS, -1), proj.reshape(N, BS, -1)


if __name__ == "__main__":
    # Small shapes consistent with the module's forward.
    N_TRANSFORMS, BATCH = 2, 2          # num_transforms, batch_size
    C_IN, H, W = 3, 16, 16
    C_ENC, HIDDEN, PROJ_DIM = 32, 64, 16

    key = jax.random.PRNGKey(0)
    k_x, k_cw, k_cb, k_w1, k_b1, k_w2, k_b2 = jax.random.split(key, 7)

    pic_set = jax.random.normal(k_x, (N_TRANSFORMS, BATCH, C_IN, H, W),
                                dtype=jnp.float32)

    # Deterministic synthetic parameters (encoder conv + projector MLP).
    # TODO(synk): the PyTorch module accepts arbitrary encoder/projector
    # sub-modules; here a 3x3-conv+ReLU+GAP encoder (two_outputs) and a
    # 2-layer MLP projector stand in for them.
    conv_w = 0.1 * jax.random.normal(k_cw, (9 * C_IN, C_ENC), dtype=jnp.float32)
    conv_b = 0.1 * jax.random.normal(k_cb, (1, C_ENC), dtype=jnp.float32)
    w1 = 0.1 * jax.random.normal(k_w1, (C_ENC, HIDDEN), dtype=jnp.float32)
    b1 = 0.1 * jax.random.normal(k_b1, (1, HIDDEN), dtype=jnp.float32)
    w2 = 0.1 * jax.random.normal(k_w2, (HIDDEN, PROJ_DIM), dtype=jnp.float32)
    b2 = 0.1 * jax.random.normal(k_b2, (1, PROJ_DIM), dtype=jnp.float32)

    h, proj = cl_block_forward(pic_set, conv_w, conv_b, w1, b1, w2, b2)
    h, proj = jax.block_until_ready((h, proj))

    h_ref, proj_ref = reference_forward(pic_set, conv_w, conv_b, w1, b1, w2, b2)
    assert h.shape == (N_TRANSFORMS, BATCH, C_ENC)
    assert proj.shape == (N_TRANSFORMS, BATCH, PROJ_DIM)
    assert jnp.allclose(h, h_ref, rtol=1e-4, atol=1e-4), \
        float(jnp.max(jnp.abs(h - h_ref)))
    assert jnp.allclose(proj, proj_ref, rtol=1e-4, atol=1e-4), \
        float(jnp.max(jnp.abs(proj - proj_ref)))

    print("KERNEL_OK")
</pallas_src>

<mosaic_0001>
module attributes {stable_mosaic.version = 11 : i64} {
  func.func @clblock_kernel(%arg0: i32, %arg1: memref<2x288x9xf32, #tpu.memory_space<vmem>>, %arg2: memref<3x9x128xf32, #tpu.memory_space<vmem>>, %arg3: memref<1x128xf32, #tpu.memory_space<vmem>>, %arg4: memref<128x128xf32, #tpu.memory_space<vmem>>, %arg5: memref<1x128xf32, #tpu.memory_space<vmem>>, %arg6: memref<128x128xf32, #tpu.memory_space<vmem>>, %arg7: memref<1x128xf32, #tpu.memory_space<vmem>>, %arg8: memref<1x2x128xf32, #tpu.memory_space<vmem>>, %arg9: memref<1x2x128xf32, #tpu.memory_space<vmem>>) attributes {dimension_semantics = [#tpu.dimension_semantics<parallel>], iteration_bounds = array<i64: 2>, scalar_prefetch = 0 : i64, scratch_operands = 0 : i64, tpu.core_type = #tpu.core_type<tc>, window_params = [{transform_indices = @transform_0, window_bounds = array<i64: 2, 288, 9>}, {pipeline_mode = #tpu.pipeline_mode<synchronous>, transform_indices = @transform_1, window_bounds = array<i64: 3, 9, 128>}, {pipeline_mode = #tpu.pipeline_mode<synchronous>, transform_indices = @transform_2, window_bounds = array<i64: 1, 128>}, {pipeline_mode = #tpu.pipeline_mode<synchronous>, transform_indices = @transform_3, window_bounds = array<i64: 128, 128>}, {pipeline_mode = #tpu.pipeline_mode<synchronous>, transform_indices = @transform_4, window_bounds = array<i64: 1, 128>}, {pipeline_mode = #tpu.pipeline_mode<synchronous>, transform_indices = @transform_5, window_bounds = array<i64: 128, 128>}, {pipeline_mode = #tpu.pipeline_mode<synchronous>, transform_indices = @transform_6, window_bounds = array<i64: 1, 128>}, {transform_indices = @transform_7, window_bounds = array<i64: 1, 2, 128>}, {transform_indices = @transform_8, window_bounds = array<i64: 1, 2, 128>}]} {
    %c0 = arith.constant 0 : index
    %c0_0 = arith.constant 0 : index
    %c0_1 = arith.constant 0 : index
    %0 = vector.load %arg1[%c0, %c0_0, %c0_1] : memref<2x288x9xf32, #tpu.memory_space<vmem>>, vector<2x288x9xf32>
    %cst = arith.constant 0.000000e+00 : f32
    %1 = vector.broadcast %cst : f32 to vector<512x128xf32>
    %2 = vector.extract_strided_slice %0 {offsets = [0, 0, 0], sizes = [2, 256, 9], strides = [1, 1, 1]} : vector<2x288x9xf32> to vector<2x256x9xf32>
    %3 = vector.shape_cast %2 : vector<2x256x9xf32> to vector<512x9xf32>
    %c0_2 = arith.constant 0 : index
    %c0_3 = arith.constant 0 : index
    %c0_4 = arith.constant 0 : index
    %4 = vector.load %arg2[%c0_2, %c0_3, %c0_4] : memref<3x9x128xf32, #tpu.memory_space<vmem>>, vector<1x9x128xf32>
    %5 = vector.shape_cast %4 : vector<1x9x128xf32> to vector<9x128xf32>
    %cst_5 = arith.constant dense<0.000000e+00> : vector<512x128xf32>
    %6 = tpu.matmul %3, %5, %cst_5 {dimension_numbers = #tpu.dot_dimension_numbers<[1], [0], [0], [1], [0, 0, 1, 1], [], []>} : vector<512x9xf32>, vector<9x128xf32>, vector<512x128xf32> -> vector<512x128xf32>
    %7 = arith.addf %1, %6 : vector<512x128xf32>
    %8 = vector.extract_strided_slice %0 {offsets = [0, 16, 0], sizes = [2, 256, 9], strides = [1, 1, 1]} : vector<2x288x9xf32> to vector<2x256x9xf32>
    %9 = vector.shape_cast %8 : vector<2x256x9xf32> to vector<512x9xf32>
    %c1 = arith.constant 1 : index
    %c0_6 = arith.constant 0 : index
    %c0_7 = arith.constant 0 : index
    %10 = vector.load %arg2[%c1, %c0_6, %c0_7] : memref<3x9x128xf32, #tpu.memory_space<vmem>>, vector<1x9x128xf32>
    %11 = vector.shape_cast %10 : vector<1x9x128xf32> to vector<9x128xf32>
    %cst_8 = arith.constant dense<0.000000e+00> : vector<512x128xf32>
    %12 = tpu.matmul %9, %11, %cst_8 {dimension_numbers = #tpu.dot_dimension_numbers<[1], [0], [0], [1], [0, 0, 1, 1], [], []>} : vector<512x9xf32>, vector<9x128xf32>, vector<512x128xf32> -> vector<512x128xf32>
    %13 = arith.addf %7, %12 : vector<512x128xf32>
    %14 = vector.extract_strided_slice %0 {offsets = [0, 32, 0], sizes = [2, 256, 9], strides = [1, 1, 1]} : vector<2x288x9xf32> to vector<2x256x9xf32>
    %15 = vector.shape_cast %14 : vector<2x256x9xf32> to vector<512x9xf32>
    %c2 = arith.constant 2 : index
    %c0_9 = arith.constant 0 : index
    %c0_10 = arith.constant 0 : index
    %16 = vector.load %arg2[%c2, %c0_9, %c0_10] : memref<3x9x128xf32, #tpu.memory_space<vmem>>, vector<1x9x128xf32>
    %17 = vector.shape_cast %16 : vector<1x9x128xf32> to vector<9x128xf32>
    %cst_11 = arith.constant dense<0.000000e+00> : vector<512x128xf32>
    %18 = tpu.matmul %15, %17, %cst_11 {dimension_numbers = #tpu.dot_dimension_numbers<[1], [0], [0], [1], [0, 0, 1, 1], [], []>} : vector<512x9xf32>, vector<9x128xf32>, vector<512x128xf32> -> vector<512x128xf32>
    %19 = arith.addf %13, %18 : vector<512x128xf32>
    %c0_12 = arith.constant 0 : index
    %c0_13 = arith.constant 0 : index
    %20 = vector.load %arg3[%c0_12, %c0_13] : memref<1x128xf32, #tpu.memory_space<vmem>>, vector<1x128xf32>
    %21 = vector.broadcast %20 : vector<1x128xf32> to vector<512x128xf32>
    %22 = arith.addf %19, %21 : vector<512x128xf32>
    %cst_14 = arith.constant 0.000000e+00 : f32
    %23 = vector.broadcast %cst_14 : f32 to vector<512x128xf32>
    %24 = arith.maximumf %22, %23 : vector<512x128xf32>
    %25 = vector.shape_cast %24 : vector<512x128xf32> to vector<2x256x128xf32>
    %cst_15 = arith.constant dense<0.000000e+00> : vector<2x128xf32>
    %26 = vector.multi_reduction <add>, %25, %cst_15 [1] : vector<2x256x128xf32> to vector<2x128xf32>
    %cst_16 = arith.constant 3.906250e-03 : f32
    %27 = vector.broadcast %cst_16 : f32 to vector<2x128xf32>
    %28 = arith.mulf %26, %27 : vector<2x128xf32>
    %c0_17 = arith.constant 0 : index
    %c0_18 = arith.constant 0 : index
    %c0_19 = arith.constant 0 : index
    %29 = vector.load %arg8[%c0_17, %c0_18, %c0_19] : memref<1x2x128xf32, #tpu.memory_space<vmem>>, vector<1x2x128xf32>
    %30 = vector.shape_cast %29 : vector<1x2x128xf32> to vector<2x128xf32>
    %31 = vector.shape_cast %28 : vector<2x128xf32> to vector<1x2x128xf32>
    tpu.vector_store %arg8[%c0_17, %c0_18, %c0_19], %31 {strides = array<i32>} : memref<1x2x128xf32, #tpu.memory_space<vmem>>, vector<1x2x128xf32>,
    %c0_20 = arith.constant 0 : index
    %c0_21 = arith.constant 0 : index
    %32 = vector.load %arg4[%c0_20, %c0_21] : memref<128x128xf32, #tpu.memory_space<vmem>>, vector<128x128xf32>
    %cst_22 = arith.constant dense<0.000000e+00> : vector<2x128xf32>
    %33 = tpu.matmul %28, %32, %cst_22 {dimension_numbers = #tpu.dot_dimension_numbers<[1], [0], [0], [1], [0, 0, 1, 1], [], []>} : vector<2x128xf32>, vector<128x128xf32>, vector<2x128xf32> -> vector<2x128xf32>
    %c0_23 = arith.constant 0 : index
    %c0_24 = arith.constant 0 : index
    %34 = vector.load %arg5[%c0_23, %c0_24] : memref<1x128xf32, #tpu.memory_space<vmem>>, vector<1x128xf32>
    %35 = vector.broadcast %34 : vector<1x128xf32> to vector<2x128xf32>
    %36 = arith.addf %33, %35 : vector<2x128xf32>
    %cst_25 = arith.constant 0.000000e+00 : f32
    %37 = vector.broadcast %cst_25 : f32 to vector<2x128xf32>
    %38 = arith.maximumf %36, %37 : vector<2x128xf32>
    %c0_26 = arith.constant 0 : index
    %c0_27 = arith.constant 0 : index
    %39 = vector.load %arg6[%c0_26, %c0_27] : memref<128x128xf32, #tpu.memory_space<vmem>>, vector<128x128xf32>
    %cst_28 = arith.constant dense<0.000000e+00> : vector<2x128xf32>
    %40 = tpu.matmul %38, %39, %cst_28 {dimension_numbers = #tpu.dot_dimension_numbers<[1], [0], [0], [1], [0, 0, 1, 1], [], []>} : vector<2x128xf32>, vector<128x128xf32>, vector<2x128xf32> -> vector<2x128xf32>
    %c0_29 = arith.constant 0 : index
    %c0_30 = arith.constant 0 : index
    %41 = vector.load %arg7[%c0_29, %c0_30] : memref<1x128xf32, #tpu.memory_space<vmem>>, vector<1x128xf32>
    %42 = vector.broadcast %41 : vector<1x128xf32> to vector<2x128xf32>
    %43 = arith.addf %40, %42 : vector<2x128xf32>
    %c0_31 = arith.constant 0 : index
    %c0_32 = arith.constant 0 : index
    %c0_33 = arith.constant 0 : index
    %44 = vector.load %arg9[%c0_31, %c0_32, %c0_33] : memref<1x2x128xf32, #tpu.memory_space<vmem>>, vector<1x2x128xf32>
    %45 = vector.shape_cast %44 : vector<1x2x128xf32> to vector<2x128xf32>
    %46 = vector.shape_cast %43 : vector<2x128xf32> to vector<1x2x128xf32>
    tpu.vector_store %arg9[%c0_31, %c0_32, %c0_33], %46 {strides = array<i32>} : memref<1x2x128xf32, #tpu.memory_space<vmem>>, vector<1x2x128xf32>,
    return
  }
  func.func @transform_0(%arg0: i32) -> (i32, i32, i32) {
    %c0_i32 = arith.constant 0 : i32
    %c0_i32_0 = arith.constant 0 : i32
    %c0_i32_1 = arith.constant 0 : i32
    return %arg0, %c0_i32, %c0_i32_0 : i32, i32, i32
  }
  func.func @transform_1(%arg0: i32) -> (i32, i32, i32) {
    %c0_i32 = arith.constant 0 : i32
    %c0_i32_0 = arith.constant 0 : i32
    %c0_i32_1 = arith.constant 0 : i32
    %c0_i32_2 = arith.constant 0 : i32
    return %c0_i32, %c0_i32_0, %c0_i32_1 : i32, i32, i32
  }
  func.func @transform_2(%arg0: i32) -> (i32, i32) {
    %c0_i32 = arith.constant 0 : i32
    %c0_i32_0 = arith.constant 0 : i32
    %c0_i32_1 = arith.constant 0 : i32
    return %c0_i32, %c0_i32_0 : i32, i32
  }
  func.func @transform_3(%arg0: i32) -> (i32, i32) {
    %c0_i32 = arith.constant 0 : i32
    %c0_i32_0 = arith.constant 0 : i32
    %c0_i32_1 = arith.constant 0 : i32
    return %c0_i32, %c0_i32_0 : i32, i32
  }
  func.func @transform_4(%arg0: i32) -> (i32, i32) {
    %c0_i32 = arith.constant 0 : i32
    %c0_i32_0 = arith.constant 0 : i32
    %c0_i32_1 = arith.constant 0 : i32
    return %c0_i32, %c0_i32_0 : i32, i32
  }
  func.func @transform_5(%arg0: i32) -> (i32, i32) {
    %c0_i32 = arith.constant 0 : i32
    %c0_i32_0 = arith.constant 0 : i32
    %c0_i32_1 = arith.constant 0 : i32
    return %c0_i32, %c0_i32_0 : i32, i32
  }
  func.func @transform_6(%arg0: i32) -> (i32, i32) {
    %c0_i32 = arith.constant 0 : i32
    %c0_i32_0 = arith.constant 0 : i32
    %c0_i32_1 = arith.constant 0 : i32
    return %c0_i32, %c0_i32_0 : i32, i32
  }
  func.func @transform_7(%arg0: i32) -> (i32, i32, i32) {
    %c0_i32 = arith.constant 0 : i32
    %c0_i32_0 = arith.constant 0 : i32
    %c0_i32_1 = arith.constant 0 : i32
    return %arg0, %c0_i32, %c0_i32_0 : i32, i32, i32
  }
  func.func @transform_8(%arg0: i32) -> (i32, i32, i32) {
    %c0_i32 = arith.constant 0 : i32
    %c0_i32_0 = arith.constant 0 : i32
    %c0_i32_1 = arith.constant 0 : i32
    return %arg0, %c0_i32, %c0_i32_0 : i32, i32, i32
  }
}

</mosaic_0001>

<bundles_post_ra>
// kernel: cl_block_forward.1
= control target key start
LH: loop header
LB: loop body
LE: loop exit
PB: predicated region body
PF: predicated region fallthrough
CT: control target
= control target key end

     0   :  { %s4675_s0 = inlined_call_operand.vmem [shape: f32[4,288,9], index: 0, kind: input, shape index: {}]   ;;  %s4676_s1 = inlined_call_operand.vmem [shape: f32[3,9,128], index: 1, kind: input, shape index: {}]   ;;  %s4677_s2 = inlined_call_operand.vmem [shape: f32[1,128], index: 2, kind: input, shape index: {}]   ;;  %s4678_s3 = inlined_call_operand.vmem [shape: f32[128,128], index: 3, kind: input, shape index: {}]   ;;  %s4679_s4 = inlined_call_operand.vmem [shape: f32[1,128], index: 4, kind: input, shape index: {}]   ;;  %s4680_s5 = inlined_call_operand.vmem [shape: f32[128,128], index: 5, kind: input, shape index: {}]   ;;  %s4681_s6 = inlined_call_operand.vmem [shape: f32[1,128], index: 6, kind: input, shape index: {}]   ;;  %s4682_s7 = inlined_call_operand.hbm [shape: f32[2,2,128], index: 7, kind: output, shape index: {0}]   ;;  %s4683_s8 = inlined_call_operand.hbm [shape: f32[2,2,128], index: 8, kind: output, shape index: {1}]  }
   0x1   :  { %4688 = sst [smem:[#allocation25_spill]] %s4675_s0 }
   0x2   :  { %14 = vsyncpa [#allocation3], 0 }
   0x3   :  { %16 = vsyncpa [#allocation3 + $0x1], 0 }
   0x4   :  { %17 = vsyncpa [#allocation5], 0 }
   0x5   :  { %19 = vsyncpa [#allocation5 + $0x1], 0  ;;  %s3384_s27 = smov 0   ;;  %s3386_s28 = smov 0  }
   0x6   :  { %s3388_s29 = smov 0   ;;  %s3390_s30 = smov 0  }
   0x7 LB: > { %s3405_s9 = sadd.s32 4294967295, %s3333_s30   ;;  %s2374_s10 = sadd.s32 4294967294, %s3333_s30   ;;  %s3333_s30 = sphi %s3390_s30, %s4732_s30   ;;  %s3329_s29 = sphi %s3388_s29, %s4731_s29   ;;  %s3325_s28 = sphi %s3386_s28, %s4730_s28   ;;  %s3321_s27 = sphi %s3384_s27, %s4729_s27  }
   0x8   : > { %s3409_s11 = sadd.s32 1, %s3333_s30   ;;  %s184_s12 = sadd.s32 1, %s3329_s29 }
   0x9   : > { %s181_s13 = ssub.s32 %s3333_s30, %s3409_s11  ;;  %p194_p0 = scmp.ne.s32.totalorder %s3329_s29, %s3325_s28 }
   0xa   : > { %p182_p1 = scmp.eq.s32.totalorder %s181_s13, 0  ;;  %p195_p2 = scmp.eq.s32.totalorder %s3405_s9, 1 }
   0xb   : > { %p200_p3 = scmp.ne.s32.totalorder %s3325_s28, %s3321_s27  ;;  %p201_p4 = scmp.eq.s32.totalorder %s2374_s10, 1 }
   0xc   : > { %s3420_s14 = scalar_select %p182_p1, %s3329_s29, %s184_s12  }
   0xd   : > { %p3422_p5 = por %p195_p2, %p194_p0  ;;  %p3426_p6 = por %p201_p4, %p200_p3 }
   0xe   : > { %p2377_p7 = scmp.ge.s32.totalorder %s3333_s30, 1  ;;  %p273_p8 = scmp.lt.s32.totalorder %s3333_s30, 3 }
  0x10   : > { %p274_p9 = pnand %p2377_p7, %p273_p8 }
  0x12   : > { %277 = sbr.rel (%p274_p9) target bundleno = 866 (0x362), region = 48 }
  0x17   : > { %v2383_v0 = vld [vmem:[%s4676_s1 + $0x18] sm:$0x1]  ;;  %vm590_vm0 = vcmask 1040384   ;;  %v2382_v1 = vld [vmem:[%s4676_s1 + $0x10] sm:$0xff]  ;;  %s2380_s21 = sshll.u32 %s3405_s9, 1  ;;  %vm397_vm1 = vcmask 72704  }
  0x18   : > { %2822 = vmatprep.subr.msk.mxu0 %vm590_vm0, %v2383_v0  ;;  %3192 = vmatprep.subr.msk.mxu1 %vm590_vm0, %v2383_v0  ;;  %p314_p10 = scmp.lt.s32.totalorder %s2380_s21, 3  ;;  %v2515_v2 = vld [vmem:[%s4676_s1 + $0x28] sm:$0x1]  ;;  %s4691_s0 = sld [smem:[#allocation25_spill]]  ;;  %v2514_v10 = vld [vmem:[%s4676_s1 + $0x20] sm:$0xff]  ;;  %vm3336_vm2 = vmmov 0  }
  0x19   : > { %2823 = vmatpush3.msk.msra.mxu0 %vm590_vm0, %v2383_v0  ;;  %3194 = vmatpush3.msk.msra.mxu1 %vm590_vm0, %v2383_v0  ;;  %v393_v3 = vld [vmem:[%s4676_s1 + $0x8] sm:$0x1]  ;;  %v392_v11 = vld [vmem:[%s4676_s1] sm:$0xff]  ;;  %s4533_s17 = sand.u32 1, %s3325_s28   ;;  %vm2059_vm3 = vcmask 1041409   ;;  %s4686_s23 = sshll.u32 %s3405_s9, 5 }
  0x1a   : > { %2824 = vmatprep.subr.mxu0 %v2382_v1  ;;  %3193 = vmatprep.subr.mxu1 %v2382_v1  ;;  %s4734_s21 = smov (!%p314_p10, %s2380_s21), 3  ;;  %s4687_s18 = sshll.u32 %s4533_s17, 1 }
  0x1b   : > { %2825 = vmatpush3.msra.mxu0 %v2382_v1  ;;  %3195 = vmatpush3.msra.mxu1 %v2382_v1  ;;  %s3196_s26 = smul.u32 288, %s4734_s21  ;;  %s4544_s22 = scalar_lea.vmem [#allocation2], %s4687_s18 }
  0x1c   : > { %3022 = vmatprep.subr.msk.mxu0 %vm590_vm0, %v2515_v2  ;;  %2922 = vmatprep.subr.msk.mxu1 %vm590_vm0, %v393_v3  ;;  %s2270_s24 = sshll.u32 %s4544_s22, 4  ;;  %s2268_s10 = scalar_lea.hbm %s4682_s7, %s4686_s23  ;;  %s2271_s24 = int_to_ptr.vmem [resolvable:$true] %s2270_s24 }
  0x1d   : > { %s2252_s12 = scalar_lea.sflag [#allocation3], %s4533_s17  ;;  %s3337_s19 = smov [#allocation2]  }
  0x1e   : > { %s3454_s13 = scalar_lea.vmem %s4691_s0, %s3196_s26  ;;  %s3247_s20 = sshll.u32 %s3337_s19, 4  ;;  %s3248_s20 = int_to_ptr.vmem [resolvable:$false] %s3247_s20 }
  0x1f   : > { %v3457_v4 = vld [vmem:[%s3454_s13 + $0x10] sm:$0xff]  ;;  %v3460_v5 = vld [vmem:[%s3454_s13 + $0x180] sm:$0xff]  ;;  %v3463_v6 = vld [vmem:[%s3454_s13 + $0x18] sm:$0xff]  ;;  %s3249_s21 = scalar_lea.vmem %s3248_s20, 64  ;;  %p3250_p0 = scmp.lt.s32.totalorder %s2271_s24, %s3248_s20 }
  0x20   : > { %2826 = vmatprep.mubr.msk.f32.mxu0 %vm397_vm1, %v3457_v4  ;;  %2889 = vmatprep.mubr.msk.f32.mxu1 %vm397_vm1, %v3460_v5  ;;  %v3470_v7 = vld [vmem:[%s3454_s13 + $0x188] sm:$0xff]  ;;  %v3473_v8 = vld [vmem:[%s3454_s13 + $0x20] sm:$0xff]  ;;  %v3476_v9 = vld [vmem:[%s3454_s13 + $0x190] sm:$0xff] }
  0x21   : > { %2827 = vmatmul.mubr.msk.f32.vlgmr.msra.gmra.mxu0 %vm397_vm1, %v3463_v6  ;;  %2890 = vmatmul.mubr.msk.f32.vlgmr.msra.gmra.mxu1 %vm397_vm1, %v3470_v7  ;;  %v3492_v12 = vld [vmem:[%s3454_s13 + $0x28] sm:$0xff]  ;;  %v3495_v13 = vld [vmem:[%s3454_s13 + $0x198] sm:$0xff]  ;;  %v3500_v14 = vld [vmem:[%s3454_s13 + $0x30] sm:$0xff] }
  0x22   : > { %3023 = vmatpush3.msk.msra.mxu0 %vm590_vm0, %v2515_v2  ;;  %2829 = vmatprep.mubr.msk.f32.mxu0 %vm397_vm1, %v3473_v8  ;;  %v3503_v15 = vld [vmem:[%s3454_s13 + $0x1a0] sm:$0xff]  ;;  %v3515_v16 = vld [vmem:[%s3454_s13 + $0x38] sm:$0xff]  ;;  %v3518_v17 = vld [vmem:[%s3454_s13 + $0x1a8] sm:$0xff] }
  0x23   : > { %2892 = vmatprep.mubr.msk.f32.mxu1 %vm397_vm1, %v3476_v9  ;;  %2923 = vmatpush3.msk.msra.mxu1 %vm590_vm0, %v393_v3  ;;  %v3521_v18 = vld [vmem:[%s3454_s13 + $0x40] sm:$0xff]  ;;  %v3524_v19 = vld [vmem:[%s3454_s13 + $0x1b0] sm:$0xff]  ;;  %v3535_v20 = vld [vmem:[%s3454_s13 + $0x48] sm:$0xff] }
  0x24   : > { %3024 = vmatprep.subr.mxu0 %v2514_v10  ;;  %2924 = vmatprep.subr.mxu1 %v392_v11  ;;  %v3538_v21 = vld [vmem:[%s3454_s13 + $0x1b8] sm:$0xff]  ;;  %v3541_v22 = vld [vmem:[%s3454_s13 + $0x50] sm:$0xff]  ;;  %v3544_v23 = vld [vmem:[%s3454_s13 + $0x1c0] sm:$0xff] }
  0x25   : > { %2830 = vmatmul.mubr.msk.f32.gmra.mxu0 %vm397_vm1, %v3492_v12  ;;  %2893 = vmatmul.mubr.msk.f32.gmra.mxu1 %vm397_vm1, %v3495_v13  ;;  %v3555_v24 = vld [vmem:[%s3454_s13 + $0x58] sm:$0xff]  ;;  %v3558_v25 = vld [vmem:[%s3454_s13 + $0x1c8] sm:$0xff]  ;;  %v3561_v26 = vld [vmem:[%s3454_s13 + $0x60] sm:$0xff] }
  0x26   : > { %2832 = vmatprep.mubr.msk.f32.mxu0 %vm397_vm1, %v3500_v14  ;;  %2895 = vmatprep.mubr.msk.f32.mxu1 %vm397_vm1, %v3503_v15  ;;  %v3564_v27 = vld [vmem:[%s3454_s13 + $0x1d0] sm:$0xff]  ;;  %v3575_v28 = vld [vmem:[%s3454_s13 + $0x68] sm:$0xff]  ;;  %v3578_v29 = vld [vmem:[%s3454_s13 + $0x1d8] sm:$0xff] }
  0x27   : > { %3025 = vmatpush3.msra.mxu0 %v2514_v10  ;;  %2925 = vmatpush3.msra.mxu1 %v392_v11  ;;  %v3581_v30 = vld [vmem:[%s3454_s13 + $0x70] sm:$0xff]  ;;  %v3584_v31 = vld [vmem:[%s3454_s13 + $0x1e0] sm:$0xff]  ;;  %v3595_v32 = vld [vmem:[%s3454_s13 + $0x78] sm:$0xff] }
  0x28   : > { %v3598_v33 = vld [vmem:[%s3454_s13 + $0x1e8] sm:$0xff]  ;;  %v3601_v34 = vld [vmem:[%s3454_s13 + $0x80] sm:$0xff]  ;;  %v3604_v35 = vld [vmem:[%s3454_s13 + $0x1f0] sm:$0xff] }
  0x29   : > { %2833 = vmatmul.mubr.msk.f32.gmra.mxu0 %vm397_vm1, %v3515_v16  ;;  %2896 = vmatmul.mubr.msk.f32.gmra.mxu1 %vm397_vm1, %v3518_v17  ;;  %v3615_v36 = vld [vmem:[%s3454_s13 + $0x88] sm:$0xff]  ;;  %v3618_v37 = vld [vmem:[%s3454_s13 + $0x1f8] sm:$0xff]  ;;  %v3621_v38 = vld [vmem:[%s3454_s13 + $0x90] sm:$0xff] }
  0x2a   : > { %2835 = vmatprep.mubr.msk.f32.mxu0 %vm397_vm1, %v3521_v18  ;;  %2898 = vmatprep.mubr.msk.f32.mxu1 %vm397_vm1, %v3524_v19  ;;  %v3624_v39 = vld [vmem:[%s3454_s13 + $0x200] sm:$0xff]  ;;  %v3635_v40 = vld [vmem:[%s3454_s13 + $0x98] sm:$0xff]  ;;  %v3638_v41 = vld [vmem:[%s3454_s13 + $0x208] sm:$0xff] }
  0x2b   : > { %v3641_v42 = vld [vmem:[%s3454_s13 + $0xa0] sm:$0xff]  ;;  %v3644_v43 = vld [vmem:[%s3454_s13 + $0x210] sm:$0xff]  ;;  %v3655_v44 = vld [vmem:[%s3454_s13 + $0xa8] sm:$0xff] }
  0x2c   : > { %v3658_v45 = vld [vmem:[%s3454_s13 + $0x218] sm:$0xff]  ;;  %v3661_v46 = vld [vmem:[%s3454_s13 + $0xb0] sm:$0xff]  ;;  %v3664_v47 = vld [vmem:[%s3454_s13 + $0x220] sm:$0xff] }
  0x2d   : > { %2836 = vmatmul.mubr.msk.f32.gmra.mxu0 %vm397_vm1, %v3535_v20  ;;  %2899 = vmatmul.mubr.msk.f32.gmra.mxu1 %vm397_vm1, %v3538_v21  ;;  %v3675_v48 = vld [vmem:[%s3454_s13 + $0xb8] sm:$0xff]  ;;  %v3678_v49 = vld [vmem:[%s3454_s13 + $0x228] sm:$0xff]  ;;  %v3681_v50 = vld [vmem:[%s3454_s13 + $0xc0] sm:$0xff] }
  0x2e   : > { %2838 = vmatprep.mubr.msk.f32.mxu0 %vm397_vm1, %v3541_v22  ;;  %2901 = vmatprep.mubr.msk.f32.mxu1 %vm397_vm1, %v3544_v23  ;;  %v320_v51 = vld [vmem:[%s3454_s13] sm:$0xff]  ;;  %v3692_v52 = vld [vmem:[%s3454_s13 + $0xc8] sm:$0xff]  ;;  %v3696_v54 = vld [vmem:[%s3454_s13 + $0xd0] sm:$0xff] }
  0x2f   : > { %v321_v53 = vld [vmem:[%s3454_s13 + $0x8] sm:$0xff]  ;;  %v3706_v55 = vld [vmem:[%s3454_s13 + $0xd8] sm:$0xff]  ;;  %v3709_v56 = vld [vmem:[%s3454_s13 + $0xe0] sm:$0xff] }
  0x30   : > { %v3720_v57 = vld [vmem:[%s3454_s13 + $0xe8] sm:$0xff]  ;;  %v3723_v58 = vld [vmem:[%s3454_s13 + $0xf0] sm:$0xff]  ;;  %v3734_v59 = vld [vmem:[%s3454_s13 + $0xf8] sm:$0xff] }
  0x31   : > { %2839 = vmatmul.mubr.msk.f32.gmra.mxu0 %vm397_vm1, %v3555_v24  ;;  %2902 = vmatmul.mubr.msk.f32.gmra.mxu1 %vm397_vm1, %v3558_v25  ;;  %v3737_v60 = vld [vmem:[%s3454_s13 + $0x100] sm:$0xff]  ;;  %v3748_v61 = vld [vmem:[%s3454_s13 + $0x108] sm:$0xff]  ;;  %v358_v62 = vld [vmem:[%s3454_s13 + $0x130] sm:$0xff] }
  0x32   : > { %2841 = vmatprep.mubr.msk.f32.mxu0 %vm397_vm1, %v3561_v26  ;;  %2904 = vmatprep.mubr.msk.f32.mxu1 %vm397_vm1, %v3564_v27  ;;  %v359_v63 = vld [vmem:[%s3454_s13 + $0x138] sm:$0xff]  ;;  %v3760_v0 = vld [vmem:[%s3454_s13 + $0x140] sm:$0xff]  ;;  %v3770_v1 = vld [vmem:[%s3454_s13 + $0x148] sm:$0xff] }
  0x33   : > { %v3773_v2 = vld [vmem:[%s3454_s13 + $0x150] sm:$0xff]  ;;  %v3784_v3 = vld [vmem:[%s3454_s13 + $0x158] sm:$0xff] }
  0x34   : > { %v3801_v10 = vld [vmem:[%s3454_s13 + $0x170] sm:$0xff]  ;;  %v3812_v11 = vld [vmem:[%s3454_s13 + $0x178] sm:$0xff] }
  0x35   : > { %2842 = vmatmul.mubr.msk.f32.gmra.mxu0 %vm397_vm1, %v3575_v28  ;;  %2905 = vmatmul.mubr.msk.f32.gmra.mxu1 %vm397_vm1, %v3578_v29 }
  0x36   : > { %2844 = vmatprep.mubr.msk.f32.mxu0 %vm397_vm1, %v3581_v30  ;;  %2907 = vmatprep.mubr.msk.f32.mxu1 %vm397_vm1, %v3584_v31 }
  0x39   : > { %2845 = vmatmul.mubr.msk.f32.gmra.mxu0 %vm397_vm1, %v3595_v32  ;;  %2908 = vmatmul.mubr.msk.f32.gmra.mxu1 %vm397_vm1, %v3598_v33 }
  0x3a   : > { %2847 = vmatprep.mubr.msk.f32.mxu0 %vm397_vm1, %v3601_v34  ;;  %2910 = vmatprep.mubr.msk.f32.mxu1 %vm397_vm1, %v3604_v35 }
  0x3d   : > { %2848 = vmatmul.mubr.msk.f32.gmra.mxu0 %vm397_vm1, %v3615_v36  ;;  %2911 = vmatmul.mubr.msk.f32.gmra.mxu1 %vm397_vm1, %v3618_v37 }
  0x3e   : > { %2850 = vmatprep.mubr.msk.f32.mxu0 %vm397_vm1, %v3621_v38  ;;  %2913 = vmatprep.mubr.msk.f32.mxu1 %vm397_vm1, %v3624_v39 }
  0x41   : > { %2851 = vmatmul.mubr.msk.f32.gmra.mxu0 %vm397_vm1, %v3635_v40  ;;  %2914 = vmatmul.mubr.msk.f32.gmra.mxu1 %vm397_vm1, %v3638_v41 }
  0x42   : > { %2853 = vmatprep.mubr.msk.f32.mxu0 %vm397_vm1, %v3641_v42  ;;  %2916 = vmatprep.mubr.msk.f32.mxu1 %vm397_vm1, %v3644_v43 }
  0x45   : > { %2854 = vmatmul.mubr.msk.f32.gmra.mxu0 %vm397_vm1, %v3655_v44  ;;  %2917 = vmatmul.mubr.msk.f32.gmra.mxu1 %vm397_vm1, %v3658_v45 }
  0x46   : > { %2856 = vmatprep.mubr.msk.f32.mxu0 %vm397_vm1, %v3661_v46  ;;  %2919 = vmatprep.mubr.msk.f32.mxu1 %vm397_vm1, %v3664_v47 }
  0x49   : > { %2857 = vmatmul.mubr.msk.f32.gmra.mxu0 %vm397_vm1, %v3675_v48  ;;  %2920 = vmatmul.mubr.msk.f32.gmra.mxu1 %vm397_vm1, %v3678_v49 }
  0x4a   : > { %2859 = vmatprep.mubr.msk.f32.mxu0 %vm397_vm1, %v3681_v50  ;;  %2926 = vmatprep.mubr.msk.f32.mxu1 %vm397_vm1, %v320_v51 }
  0x4d   : > { %2860 = vmatmul.mubr.msk.f32.gmra.mxu0 %vm397_vm1, %v3692_v52  ;;  %2927 = vmatmul.mubr.msk.f32.vlgmr.msra.gmra.mxu1 %vm397_vm1, %v321_v53 }
  0x4e   : > { %2862 = vmatprep.mubr.msk.f32.mxu0 %vm397_vm1, %v3696_v54  ;;  %2929 = vmatprep.mubr.msk.f32.mxu1 %vm397_vm1, %v3457_v4  ;;  %v3787_v4 = vld [vmem:[%s3454_s13 + $0x160] sm:$0xff] }
  0x51   : > { %2863 = vmatmul.mubr.msk.f32.gmra.mxu0 %vm397_vm1, %v3706_v55  ;;  %2930 = vmatmul.mubr.msk.f32.gmra.mxu1 %vm397_vm1, %v3463_v6  ;;  %v3798_v6 = vld [vmem:[%s3454_s13 + $0x168] sm:$0xff] }
  0x52   : > { %2865 = vmatprep.mubr.msk.f32.mxu0 %vm397_vm1, %v3709_v56  ;;  %2932 = vmatprep.mubr.msk.f32.mxu1 %vm397_vm1, %v3473_v8 }
  0x55   : > { %2866 = vmatmul.mubr.msk.f32.gmra.mxu0 %vm397_vm1, %v3720_v57  ;;  %2933 = vmatmul.mubr.msk.f32.gmra.mxu1 %vm397_vm1, %v3492_v12 }
  0x56   : > { %2868 = vmatprep.mubr.msk.f32.mxu0 %vm397_vm1, %v3723_v58  ;;  %2935 = vmatprep.mubr.msk.f32.mxu1 %vm397_vm1, %v3500_v14 }
  0x59   : > { %2869 = vmatmul.mubr.msk.f32.gmra.mxu0 %vm397_vm1, %v3734_v59  ;;  %2936 = vmatmul.mubr.msk.f32.gmra.mxu1 %vm397_vm1, %v3515_v16 }
  0x5a   : > { %2871 = vmatprep.mubr.msk.f32.mxu0 %vm397_vm1, %v3737_v60  ;;  %2938 = vmatprep.mubr.msk.f32.mxu1 %vm397_vm1, %v3521_v18 }
  0x5d   : > { %2872 = vmatmul.mubr.msk.f32.gmra.mxu0 %vm397_vm1, %v3748_v61  ;;  %2939 = vmatmul.mubr.msk.f32.gmra.mxu1 %vm397_vm1, %v3535_v20 }
  0x5e   : > { %2874 = vmatprep.mubr.msk.f32.mxu0 %vm397_vm1, %v358_v62  ;;  %2941 = vmatprep.mubr.msk.f32.mxu1 %vm397_vm1, %v3541_v22 }
  0x61   : > { %2875 = vmatmul.mubr.msk.f32.gmra.mxu0 %vm397_vm1, %v359_v63  ;;  %2942 = vmatmul.mubr.msk.f32.gmra.mxu1 %vm397_vm1, %v3555_v24 }
  0x62   : > { %2877 = vmatprep.mubr.msk.f32.mxu0 %vm397_vm1, %v3760_v0  ;;  %2944 = vmatprep.mubr.msk.f32.mxu1 %vm397_vm1, %v3561_v26 }
  0x65   : > { %2878 = vmatmul.mubr.msk.f32.gmra.mxu0 %vm397_vm1, %v3770_v1  ;;  %2945 = vmatmul.mubr.msk.f32.gmra.mxu1 %vm397_vm1, %v3575_v28 }
  0x66   : > { %2880 = vmatprep.mubr.msk.f32.mxu0 %vm397_vm1, %v3773_v2  ;;  %2947 = vmatprep.mubr.msk.f32.mxu1 %vm397_vm1, %v3581_v30 }
  0x69   : > { %2881 = vmatmul.mubr.msk.f32.gmra.mxu0 %vm397_vm1, %v3784_v3  ;;  %2948 = vmatmul.mubr.msk.f32.gmra.mxu1 %vm397_vm1, %v3595_v32 }
  0x6a   : > { %2883 = vmatprep.mubr.msk.f32.mxu0 %vm397_vm1, %v3787_v4  ;;  %2950 = vmatprep.mubr.msk.f32.mxu1 %vm397_vm1, %v3601_v34 }
  0x6d   : > { %2884 = vmatmul.mubr.msk.f32.gmra.mxu0 %vm397_vm1, %v3798_v6  ;;  %2951 = vmatmul.mubr.msk.f32.gmra.mxu1 %vm397_vm1, %v3615_v36 }
  0x6e   : > { %2886 = vmatprep.mubr.msk.f32.mxu0 %vm397_vm1, %v3801_v10  ;;  %2953 = vmatprep.mubr.msk.f32.mxu1 %vm397_vm1, %v3621_v38 }
  0x71   : > { %2887 = vmatmul.mubr.msk.f32.gmra.mxu0 %vm397_vm1, %v3812_v11  ;;  %2954 = vmatmul.mubr.msk.f32.gmra.mxu1 %vm397_vm1, %v3635_v40 }
  0x72   : > { %2956 = vmatprep.mubr.msk.f32.mxu1 %vm397_vm1, %v3641_v42  ;;  %3026 = vmatprep.mubr.msk.f32.mxu0 %vm397_vm1, %v3473_v8  ;;  %v356_v8 = vld [vmem:[%s3454_s13 + $0x120] sm:$0xff] }
  0x75   : > { %2957 = vmatmul.mubr.msk.f32.gmra.mxu1 %vm397_vm1, %v3655_v44  ;;  %3027 = vmatmul.mubr.msk.f32.vlgmr.msra.gmra.mxu0 %vm397_vm1, %v3492_v12  ;;  %v357_v12 = vld [vmem:[%s3454_s13 + $0x128] sm:$0xff] }
  0x76   : > { %2959 = vmatprep.mubr.msk.f32.mxu1 %vm397_vm1, %v3661_v46  ;;  %3029 = vmatprep.mubr.msk.f32.mxu0 %vm397_vm1, %v3500_v14  ;;  %v354_v14 = vld [vmem:[%s3454_s13 + $0x110] sm:$0xff] }
  0x79   : > { %2960 = vmatmul.mubr.msk.f32.gmra.mxu1 %vm397_vm1, %v3675_v48  ;;  %3030 = vmatmul.mubr.msk.f32.gmra.mxu0 %vm397_vm1, %v3515_v16  ;;  %v355_v16 = vld [vmem:[%s3454_s13 + $0x118] sm:$0xff] }
  0x7a   : > { %2962 = vmatprep.mubr.msk.f32.mxu1 %vm397_vm1, %v3681_v50  ;;  %3032 = vmatprep.mubr.msk.f32.mxu0 %vm397_vm1, %v3521_v18 }
  0x7d   : > { %2963 = vmatmul.mubr.msk.f32.gmra.mxu1 %vm397_vm1, %v3692_v52  ;;  %3033 = vmatmul.mubr.msk.f32.gmra.mxu0 %vm397_vm1, %v3535_v20 }
  0x7e   : > { %2965 = vmatprep.mubr.msk.f32.mxu1 %vm397_vm1, %v3696_v54  ;;  %3035 = vmatprep.mubr.msk.f32.mxu0 %vm397_vm1, %v3541_v22 }
  0x81   : > { %2966 = vmatmul.mubr.msk.f32.gmra.mxu1 %vm397_vm1, %v3706_v55  ;;  %3036 = vmatmul.mubr.msk.f32.gmra.mxu0 %vm397_vm1, %v3555_v24 }
  0x82   : > { %2968 = vmatprep.mubr.msk.f32.mxu1 %vm397_vm1, %v3709_v56  ;;  %3038 = vmatprep.mubr.msk.f32.mxu0 %vm397_vm1, %v3561_v26 }
  0x85   : > { %2969 = vmatmul.mubr.msk.f32.gmra.mxu1 %vm397_vm1, %v3720_v57  ;;  %3039 = vmatmul.mubr.msk.f32.gmra.mxu0 %vm397_vm1, %v3575_v28  ;;  %v390_v28 = vld [vmem:[%s3454_s13 + $0x230] sm:$0xff] }
  0x86   : > { %2971 = vmatprep.mubr.msk.f32.mxu1 %vm397_vm1, %v3723_v58  ;;  %3041 = vmatprep.mubr.msk.f32.mxu0 %vm397_vm1, %v3581_v30 }
  0x89   : > { %2972 = vmatmul.mubr.msk.f32.gmra.mxu1 %vm397_vm1, %v3734_v59  ;;  %3042 = vmatmul.mubr.msk.f32.gmra.mxu0 %vm397_vm1, %v3595_v32  ;;  %v391_v32 = vld [vmem:[%s3454_s13 + $0x238] sm:$0xff]  ;;  %s3243_s13 = scalar_lea.vmem %s2271_s24, 32 }
  0x8a   : > { %2974 = vmatprep.mubr.msk.f32.mxu1 %vm397_vm1, %v356_v8  ;;  %3044 = vmatprep.mubr.msk.f32.mxu0 %vm397_vm1, %v3601_v34  ;;  %p3244_p11 = scmp.ne.s32.totalorder %s2271_s24, %s3243_s13  ;;  %p3251_p1 = scmp.lt.s32.totalorder %s3249_s21, %s3243_s13 }
  0x8c   : > { %p3245_p12 = pnand %p3244_p11, %p3422_p5  ;;  %p3252_p2 = por %p3251_p1, %p3250_p0 }
  0x8d   : > { %2975 = vmatmul.mubr.msk.f32.gmra.mxu1 %vm397_vm1, %v357_v12  ;;  %3045 = vmatmul.mubr.msk.f32.gmra.mxu0 %vm397_vm1, %v3615_v36 }
  0x8e   : > { %2977 = vmatprep.mubr.msk.f32.mxu1 %vm397_vm1, %v358_v62  ;;  %3047 = vmatprep.mubr.msk.f32.mxu0 %vm397_vm1, %v3621_v38  ;;  %p3246_p13 = pneg %p3245_p12 }
  0x90   : > { %p3253_p3 = pnand %p3252_p2, %p3246_p13 }
  0x91   : > { %2978 = vmatmul.mubr.msk.f32.gmra.mxu1 %vm397_vm1, %v359_v63  ;;  %3048 = vmatmul.mubr.msk.f32.gmra.mxu0 %vm397_vm1, %v3635_v40 }
  0x92   : > { %2980 = vmatprep.mubr.msk.f32.mxu1 %vm397_vm1, %v3760_v0  ;;  %3050 = vmatprep.mubr.msk.f32.mxu0 %vm397_vm1, %v3641_v42 }
  0x95   : > { %2981 = vmatmul.mubr.msk.f32.gmra.mxu1 %vm397_vm1, %v3770_v1  ;;  %3051 = vmatmul.mubr.msk.f32.gmra.mxu0 %vm397_vm1, %v3655_v44 }
  0x96   : > { %2983 = vmatprep.mubr.msk.f32.mxu1 %vm397_vm1, %v3773_v2  ;;  %3053 = vmatprep.mubr.msk.f32.mxu0 %vm397_vm1, %v3661_v46 }
  0x99   : > { %2984 = vmatmul.mubr.msk.f32.gmra.mxu1 %vm397_vm1, %v3784_v3  ;;  %3054 = vmatmul.mubr.msk.f32.gmra.mxu0 %vm397_vm1, %v3675_v48 }
  0x9a   : > { %2986 = vmatprep.mubr.msk.f32.mxu1 %vm397_vm1, %v3787_v4  ;;  %3056 = vmatprep.mubr.msk.f32.mxu0 %vm397_vm1, %v3681_v50 }
  0x9d   : > { %2987 = vmatmul.mubr.msk.f32.gmra.mxu1 %vm397_vm1, %v3798_v6  ;;  %3057 = vmatmul.mubr.msk.f32.gmra.mxu0 %vm397_vm1, %v3692_v52 }
  0x9e   : > { %2989 = vmatprep.mubr.msk.f32.mxu1 %vm397_vm1, %v3801_v10  ;;  %3059 = vmatprep.mubr.msk.f32.mxu0 %vm397_vm1, %v3696_v54 }
  0xa1   : > { %2990 = vmatmul.mubr.msk.f32.gmra.mxu1 %vm397_vm1, %v3812_v11  ;;  %3060 = vmatmul.mubr.msk.f32.gmra.mxu0 %vm397_vm1, %v3706_v55 }
  0xa2   : > { %2992 = vmatprep.mubr.msk.f32.mxu1 %vm397_vm1, %v3460_v5  ;;  %3062 = vmatprep.mubr.msk.f32.mxu0 %vm397_vm1, %v3709_v56 }
  0xa5   : > { %2993 = vmatmul.mubr.msk.f32.gmra.mxu1 %vm397_vm1, %v3470_v7  ;;  %3063 = vmatmul.mubr.msk.f32.gmra.mxu0 %vm397_vm1, %v3720_v57 }
  0xa6   : > { %2995 = vmatprep.mubr.msk.f32.mxu1 %vm397_vm1, %v3476_v9  ;;  %3065 = vmatprep.mubr.msk.f32.mxu0 %vm397_vm1, %v3723_v58  ;;  %v2073_v58 = vld [vmem:[%s4678_s3 + $0x50] sm:$0xff] }
  0xa9   : > { %2996 = vmatmul.mubr.msk.f32.gmra.mxu1 %vm397_vm1, %v3495_v13  ;;  %3066 = vmatmul.mubr.msk.f32.gmra.mxu0 %vm397_vm1, %v3734_v59  ;;  %v2072_v59 = vld [vmem:[%s4678_s3 + $0x48] sm:$0xff] }
  0xaa   : > { %2998 = vmatprep.mubr.msk.f32.mxu1 %vm397_vm1, %v3503_v15  ;;  %3068 = vmatprep.mubr.msk.f32.mxu0 %vm397_vm1, %v3737_v60 }
  0xad   : > { %2999 = vmatmul.mubr.msk.f32.gmra.mxu1 %vm397_vm1, %v3518_v17  ;;  %3069 = vmatmul.mubr.msk.f32.gmra.mxu0 %vm397_vm1, %v3748_v61 }
  0xae   : > { %3001 = vmatprep.mubr.msk.f32.mxu1 %vm397_vm1, %v3524_v19  ;;  %3071 = vmatprep.mubr.msk.f32.mxu0 %vm397_vm1, %v354_v14 }
  0xb1   : > { %3002 = vmatmul.mubr.msk.f32.gmra.mxu1 %vm397_vm1, %v3538_v21  ;;  %3072 = vmatmul.mubr.msk.f32.gmra.mxu0 %vm397_vm1, %v355_v16 }
  0xb2   : > { %3004 = vmatprep.mubr.msk.f32.mxu1 %vm397_vm1, %v3544_v23  ;;  %3074 = vmatprep.mubr.msk.f32.mxu0 %vm397_vm1, %v3760_v0 }
  0xb5   : > { %3005 = vmatmul.mubr.msk.f32.gmra.mxu1 %vm397_vm1, %v3558_v25  ;;  %3075 = vmatmul.mubr.msk.f32.gmra.mxu0 %vm397_vm1, %v3770_v1 }
  0xb6   : > { %3007 = vmatprep.mubr.msk.f32.mxu1 %vm397_vm1, %v3564_v27  ;;  %3077 = vmatprep.mubr.msk.f32.mxu0 %vm397_vm1, %v3773_v2  ;;  %v2071_v2 = vld [vmem:[%s4678_s3 + $0x40] sm:$0xff] }
  0xb9   : > { %3008 = vmatmul.mubr.msk.f32.gmra.mxu1 %vm397_vm1, %v3578_v29  ;;  %3078 = vmatmul.mubr.msk.f32.gmra.mxu0 %vm397_vm1, %v3784_v3 }
  0xba   : > { %3010 = vmatprep.mubr.msk.f32.mxu1 %vm397_vm1, %v3584_v31  ;;  %3080 = vmatprep.mubr.msk.f32.mxu0 %vm397_vm1, %v3787_v4 }
  0xbd   : > { %3011 = vmatmul.mubr.msk.f32.gmra.mxu1 %vm397_vm1, %v3598_v33  ;;  %3081 = vmatmul.mubr.msk.f32.gmra.mxu0 %vm397_vm1, %v3798_v6 }
  0xbe   : > { %3013 = vmatprep.mubr.msk.f32.mxu1 %vm397_vm1, %v3604_v35  ;;  %3083 = vmatprep.mubr.msk.f32.mxu0 %vm397_vm1, %v3801_v10 }
  0xc1   : > { %3014 = vmatmul.mubr.msk.f32.gmra.mxu1 %vm397_vm1, %v3618_v37  ;;  %3084 = vmatmul.mubr.msk.f32.gmra.mxu0 %vm397_vm1, %v3812_v11 }
  0xc2   : > { %3016 = vmatprep.mubr.msk.f32.mxu1 %vm397_vm1, %v3624_v39  ;;  %3086 = vmatprep.mubr.msk.f32.mxu0 %vm397_vm1, %v3460_v5  ;;  %v2078_v5 = vld [vmem:[%s4678_s3 + $0x78] sm:$0xff] }
  0xc5   : > { %3017 = vmatmul.mubr.msk.f32.gmra.mxu1 %vm397_vm1, %v3638_v41  ;;  %3087 = vmatmul.mubr.msk.f32.gmra.mxu0 %vm397_vm1, %v3470_v7  ;;  %v4684_v7 = vmov 0.0  }
  0xc6   : > { %3019 = vmatprep.mubr.msk.f32.mxu1 %vm397_vm1, %v3644_v43  ;;  %3089 = vmatprep.mubr.msk.f32.mxu0 %vm397_vm1, %v3476_v9  ;;  %v2077_v9 = vld [vmem:[%s4678_s3 + $0x70] sm:$0xff] }
  0xc7   : > { %3122 = vmatprep.subr.mxu1 %v4684_v7 }
  0xc8   : > { %3123 = vmatpush3.msra.mxu1 %v2078_v5 }
  0xc9   : > { %3020 = vmatmul.mubr.msk.f32.gmra.mxu1 %vm397_vm1, %v3658_v45  ;;  %3090 = vmatmul.mubr.msk.f32.gmra.mxu0 %vm397_vm1, %v3495_v13 }
  0xca   : > { %3092 = vmatprep.mubr.msk.f32.mxu0 %vm397_vm1, %v3503_v15  ;;  %3124 = vmatprep.subr.mxu1 %v4684_v7 }
  0xcb   : > { %3125 = vmatpush3.msra.mxu1 %v2077_v9 }
  0xcc   : > { %3126 = vmatprep.subr.mxu1 %v4684_v7 }
  0xcd   : > { %3093 = vmatmul.mubr.msk.f32.gmra.mxu0 %vm397_vm1, %v3518_v17 }
  0xce   : > { %3095 = vmatprep.mubr.msk.f32.mxu0 %vm397_vm1, %v3524_v19  ;;  %v2076_v19 = vld [vmem:[%s4678_s3 + $0x68] sm:$0xff] }
  0xcf   : > { %3127 = vmatpush3.msra.mxu1 %v2076_v19 }
  0xd0   : > { %3128 = vmatprep.subr.mxu1 %v4684_v7 }
  0xd1   : > { %3096 = vmatmul.mubr.msk.f32.gmra.mxu0 %vm397_vm1, %v3538_v21 }
  0xd2   : > { %3098 = vmatprep.mubr.msk.f32.mxu0 %vm397_vm1, %v3544_v23 }
  0xd5   : > { %3099 = vmatmul.mubr.msk.f32.gmra.mxu0 %vm397_vm1, %v3558_v25 }
  0xd6   : > { %3101 = vmatprep.mubr.msk.f32.mxu0 %vm397_vm1, %v3564_v27 }
  0xd9   : > { %3102 = vmatmul.mubr.msk.f32.gmra.mxu0 %vm397_vm1, %v3578_v29  ;;  %v2075_v29 = vld [vmem:[%s4678_s3 + $0x60] sm:$0xff] }
  0xda   : > { %3104 = vmatprep.mubr.msk.f32.mxu0 %vm397_vm1, %v3584_v31  ;;  %3129 = vmatpush3.msra.mxu1 %v2075_v29 }
  0xdb   : > { %3130 = vmatprep.subr.mxu1 %v4684_v7 }
  0xdd   : > { %3105 = vmatmul.mubr.msk.f32.gmra.mxu0 %vm397_vm1, %v3598_v33 }
  0xde   : > { %3107 = vmatprep.mubr.msk.f32.mxu0 %vm397_vm1, %v3604_v35 }
  0xe1   : > { %v4023_v13 = vpop.f32.mrf.mxu0  ;;  %v4025_v15 = vpop.f32.mrf.mxu1  ;;  %3108 = vmatmul.mubr.msk.f32.gmra.mxu0 %vm397_vm1, %v3618_v37 }
  0xe2   : > { %3110 = vmatprep.mubr.msk.f32.mxu0 %vm397_vm1, %v3624_v39  ;;  %v2074_v39 = vld [vmem:[%s4678_s3 + $0x58] sm:$0xff] }
  0xe3   : > { %v4031_v17 = vpop.f32.mrf.mxu0  ;;  %v4033_v18 = vpop.f32.mrf.mxu1  ;;  %3131 = vmatpush3.msra.mxu1 %v2074_v39 }
  0xe4   : > { %3132 = vmatprep.subr.mxu1 %v4684_v7 }
  0xe5   : > { %v4038_v20 = vpop.f32.mrf.mxu0  ;;  %v4040_v21 = vpop.f32.mrf.mxu1  ;;  %3111 = vmatmul.mubr.msk.f32.gmra.mxu0 %vm397_vm1, %v3638_v41  ;;  %3133 = vmatpush3.msra.mxu1 %v2073_v58 }
  0xe6   : > { %3113 = vmatprep.mubr.msk.f32.mxu0 %vm397_vm1, %v3644_v43  ;;  %3134 = vmatprep.subr.mxu1 %v4684_v7 }
  0xe7   : > { %v4047_v22 = vpop.f32.mrf.mxu0  ;;  %v4049_v23 = vpop.f32.mrf.mxu1  ;;  %3135 = vmatpush3.msra.mxu1 %v2072_v59 }
  0xe8   : > { %3136 = vmatprep.subr.mxu1 %v4684_v7 }
  0xe9   : > { %v4051_v24 = vpop.f32.mrf.mxu0  ;;  %v4053_v25 = vpop.f32.mrf.mxu1  ;;  %3114 = vmatmul.mubr.msk.f32.gmra.mxu0 %vm397_vm1, %v3658_v45  ;;  %3137 = vmatpush3.msra.mxu1 %v2071_v2 }
  0xea   : > { %3116 = vmatprep.mubr.msk.f32.mxu0 %vm397_vm1, %v3664_v47  ;;  %3138 = vmatprep.subr.mxu1 %v4684_v7 }
  0xeb   : > { %v4059_v26 = vpop.f32.mrf.mxu0  ;;  %v4061_v27 = vpop.f32.mrf.mxu1 }
  0xec   : > { %4692 = vst [vmem:[#allocation8_spill] sm:$0xff] %v4061_v27 }
  0xed   : > { %v4067_v30 = vpop.f32.mrf.mxu0  ;;  %v4069_v31 = vpop.f32.mrf.mxu1  ;;  %3117 = vmatmul.mubr.msk.f32.gmra.mxu0 %vm397_vm1, %v3678_v49 }
  0xee   : > { %4693 = vst [vmem:[#allocation9_spill] sm:$0xff] %v4069_v31  ;;  %3119 = vmatprep.mubr.msk.f32.mxu0 %vm397_vm1, %v390_v28 }
  0xef   : > { %v4076_v33 = vpop.f32.mrf.mxu0  ;;  %v4078_v34 = vpop.f32.mrf.mxu1 }
  0xf0   : > { %4694 = vst [vmem:[#allocation10_spill] sm:$0xff] %v4078_v34 }
  0xf1   : > { %v4080_v35 = vpop.f32.mrf.mxu0  ;;  %v4082_v36 = vpop.f32.mrf.mxu1  ;;  %3120 = vmatmul.mubr.msk.f32.gmra.mxu0 %vm397_vm1, %v391_v32 }
  0xf2   : > { %4695 = vst [vmem:[#allocation11_spill] sm:$0xff] %v4082_v36 }
  0xf3   : > { %v4085_v37 = vpop.f32.mrf.mxu0  ;;  %v4087_v38 = vpop.f32.mrf.mxu1 }
  0xf4   : > { %4696 = vst [vmem:[#allocation12_spill] sm:$0xff] %v4087_v38 }
  0xf5   : > { %v4092_v40 = vpop.f32.mrf.mxu0  ;;  %v4094_v41 = vpop.f32.mrf.mxu1 }
  0xf6   : > { %4697 = vst [vmem:[#allocation13_spill] sm:$0xff] %v4094_v41 }
  0xf7   : > { %v4097_v42 = vpop.f32.mrf.mxu0  ;;  %v4099_v43 = vpop.f32.mrf.mxu1 }
  0xf8   : > { %4698 = vst [vmem:[#allocation14_spill] sm:$0xff] %v4099_v43 }
  0xf9   : > { %v4101_v44 = vpop.f32.mrf.mxu0  ;;  %v4103_v45 = vpop.f32.mrf.mxu1 }
  0xfa   : > { %4699 = vst [vmem:[#allocation15_spill] sm:$0xff] %v4103_v45 }
  0xfb   : > { %v4105_v46 = vpop.f32.mrf.mxu0  ;;  %v4107_v47 = vpop.f32.mrf.mxu1 }
  0xfc   : > { %4700 = vst [vmem:[#allocation16_spill] sm:$0xff] %v4107_v47 }
  0xfd   : > { %v4109_v48 = vpop.f32.mrf.mxu0  ;;  %v4111_v49 = vpop.f32.mrf.mxu1 }
  0xfe   : > { %4701 = vst [vmem:[#allocation17_spill] sm:$0xff] %v4111_v49 }
  0xff   : > { %v4113_v50 = vpop.f32.mrf.mxu0  ;;  %v4115_v51 = vpop.f32.mrf.mxu1 }
 0x100   : > { %4702 = vst [vmem:[#allocation18_spill] sm:$0xff] %v4115_v51 }
 0x101   : > { %v4117_v52 = vpop.f32.mrf.mxu0  ;;  %v4119_v53 = vpop.f32.mrf.mxu1 }
 0x102   : > { %4703 = vst [vmem:[#allocation19_spill] sm:$0xff] %v4119_v53 }
 0x103   : > { %v4121_v54 = vpop.f32.mrf.mxu0  ;;  %v4123_v55 = vpop.f32.mrf.mxu1 }
 0x104   : > { %4704 = vst [vmem:[#allocation20_spill] sm:$0xff] %v4123_v55 }
 0x105   : > { %v4125_v56 = vpop.f32.mrf.mxu0  ;;  %v4127_v57 = vpop.f32.mrf.mxu1 }
 0x106   : > { %4705 = vst [vmem:[#allocation21_spill] sm:$0xff] %v4127_v57 }
 0x107   : > { %v4135_v60 = vpop.f32.mrf.mxu0  ;;  %v4137_v61 = vpop.f32.mrf.mxu1 }
 0x108   : > { %4706 = vst [vmem:[#allocation22_spill] sm:$0xff] %v4137_v61 }
 0x109   : > { %v4140_v62 = vpop.f32.mrf.mxu0  ;;  %v4142_v63 = vpop.f32.mrf.mxu1 }
 0x10a   : > { %4707 = vst [vmem:[#allocation23_spill] sm:$0xff] %v4142_v63 }
 0x10b   : > { %v4145_v0 = vpop.f32.mrf.mxu0  ;;  %v4147_v1 = vpop.f32.mrf.mxu1 }
 0x10c   : > { %4708 = vst [vmem:[#allocation24_spill] sm:$0xff] %v4147_v1 }
 0x10d   : > { %v4152_v3 = vpop.f32.mrf.mxu0  ;;  %v2928_v4 = vpop.f32.mrf.mxu1 }
 0x10e   : > { %v4156_v6 = vadd.f32 %v2928_v4, %v4023_v13  ;;  %v2070_v13 = vld [vmem:[%s4678_s3 + $0x38] sm:$0xff] }
 0x10f   : > { %v4158_v10 = vpop.f32.mrf.mxu0  ;;  %v1060_v11 = vpop.f32.mrf.mxu1  ;;  %3139 = vmatpush3.msra.mxu1 %v2070_v13 }
 0x110   : > { %v4161_v8 = vadd.f32 %v1060_v11, %v4031_v17  ;;  %3140 = vmatprep.subr.mxu1 %v4684_v7 }
 0x111   : > { %v4163_v12 = vpop.f32.mrf.mxu0  ;;  %v2931_v14 = vpop.f32.mrf.mxu1 }
 0x112   : > { %v4166_v16 = vadd.f32 %v2931_v14, %v4038_v20 }
 0x113   : > { %v4168_v5 = vpop.f32.mrf.mxu0  ;;  %v1070_v9 = vpop.f32.mrf.mxu1 }
 0x114   : > { %v4174_v19 = vadd.f32 %v1070_v9, %v4047_v22 }
 0x115   : > { %v4176_v28 = vpop.f32.mrf.mxu0  ;;  %v2934_v17 = vpop.f32.mrf.mxu1 }
 0x116   : > { %v4180_v29 = vadd.f32 %v2934_v17, %v4051_v24  ;;  %v2069_v24 = vld [vmem:[%s4678_s3 + $0x30] sm:$0xff] }
 0x117   : > { %v4182_v20 = vpop.f32.mrf.mxu0  ;;  %v1080_v32 = vpop.f32.mrf.mxu1  ;;  %3141 = vmatpush3.msra.mxu1 %v2069_v24 }
 0x118   : > { %v4185_v39 = vadd.f32 %v1080_v32, %v4059_v26  ;;  %3142 = vmatprep.subr.mxu1 %v4684_v7 }
 0x119   : > { %v4187_v58 = vpop.f32.mrf.mxu0  ;;  %v2937_v59 = vpop.f32.mrf.mxu1 }
 0x11a   : > { %v4190_v22 = vadd.f32 %v2937_v59, %v4067_v30 }
 0x11b   : > { %v4192_v2 = vpop.f32.mrf.mxu0  ;;  %v1090_v4 = vpop.f32.mrf.mxu1 }
 0x11c   : > { %v4198_v11 = vadd.f32 %v1090_v4, %v4076_v33 }
 0x11d   : > { %v4200_v14 = vpop.f32.mrf.mxu0  ;;  %v2940_v26 = vpop.f32.mrf.mxu1 }
 0x11e   : > { %v4204_v9 = vadd.f32 %v2940_v26, %v4080_v35  ;;  %v2068_v35 = vld [vmem:[%s4678_s3 + $0x28] sm:$0xff] }
 0x11f   : > { %v4206_v30 = vpop.f32.mrf.mxu0  ;;  %v1100_v13 = vpop.f32.mrf.mxu1  ;;  %3143 = vmatpush3.msra.mxu1 %v2068_v35 }
 0x120   : > { %v4209_v17 = vadd.f32 %v1100_v13, %v4085_v37  ;;  %v4709_v13 = vmov 0.0  }
 0x121   : > { %v4211_v32 = vpop.f32.mrf.mxu0  ;;  %v2943_v59 = vpop.f32.mrf.mxu1  ;;  %3144 = vmatprep.subr.mxu1 %v4709_v13  ;;  %3154 = vmatprep.mubr.msk.f32.mxu1 %vm3336_vm2, %v4709_v13 }
 0x122   : > { %v4214_v33 = vadd.f32 %v2943_v59, %v4092_v40 }
 0x123   : > { %v4216_v4 = vpop.f32.mrf.mxu0  ;;  %v1110_v24 = vpop.f32.mrf.mxu1 }
 0x124   : > { %v4222_v26 = vadd.f32 %v1110_v24, %v4097_v42 }
 0x125   : > { %v4224_v7 = vpop.f32.mrf.mxu0  ;;  %v2946_v37 = vpop.f32.mrf.mxu1 }
 0x126   : > { %v4228_v1 = vadd.f32 %v2946_v37, %v4101_v44  ;;  %v2067_v44 = vld [vmem:[%s4678_s3 + $0x20] sm:$0xff] }
 0x127   : > { %v4230_v40 = vpop.f32.mrf.mxu0  ;;  %v1120_v59 = vpop.f32.mrf.mxu1  ;;  %3145 = vmatpush3.msra.mxu1 %v2067_v44 }
 0x128   : > { %v4233_v63 = vadd.f32 %v1120_v59, %v4105_v46  ;;  %3146 = vmatprep.subr.mxu1 %v4709_v13 }
 0x129   : > { %v4235_v61 = vpop.f32.mrf.mxu0  ;;  %v2949_v57 = vpop.f32.mrf.mxu1 }
 0x12a   : > { %v4238_v42 = vadd.f32 %v2949_v57, %v4109_v48 }
 0x12b   : > { %v4240_v24 = vpop.f32.mrf.mxu0  ;;  %v1130_v35 = vpop.f32.mrf.mxu1 }
 0x12c   : > { %v4246_v37 = vadd.f32 %v1130_v35, %v4113_v50 }
 0x12d   : > { %v4248_v55 = vpop.f32.mrf.mxu0  ;;  %v2952_v46 = vpop.f32.mrf.mxu1 }
 0x12e   : > { %v4252_v59 = vadd.f32 %v2952_v46, %v4117_v52  ;;  %v2066_v52 = vld [vmem:[%s4678_s3 + $0x18] sm:$0xff] }
 0x12f   : > { %v4254_v48 = vpop.f32.mrf.mxu0  ;;  %v1140_v57 = vpop.f32.mrf.mxu1  ;;  %3147 = vmatpush3.msra.mxu1 %v2066_v52 }
 0x130   : > { %v4257_v53 = vadd.f32 %v1140_v57, %v4121_v54  ;;  %v4275_v57 = vld [vmem:[%s4677_s2] ss:$0 sm:$0xff]  ;;  %3148 = vmatprep.subr.mxu1 %v4709_v13 }
 0x131   : > { %v4259_v51 = vpop.f32.mrf.mxu0  ;;  %v2955_v49 = vpop.f32.mrf.mxu1 }
 0x132   : > { %v4262_v50 = vadd.f32 %v2955_v49, %v4125_v56 }
 0x133   : > { %v4264_v35 = vpop.f32.mrf.mxu0  ;;  %v1150_v44 = vpop.f32.mrf.mxu1 }
 0x134   : > { %v4270_v46 = vadd.f32 %v1150_v44, %v4135_v60 }
 0x135   : > { %v2958_v47 = vpop.f32.mrf.mxu1  ;;  %v3028_v54 = vpop.f32.mrf.mxu0 }
 0x136   : > { %v4279_v49 = vadd.f32 %v2958_v47, %v4140_v62  ;;  %v1783_v56 = vadd.f32 %v3028_v54, %v4156_v6 }
 0x137   : > { %v1160_v45 = vpop.f32.mrf.mxu1  ;;  %v1463_v43 = vpop.f32.mrf.mxu0 }
 0x138   : > { %v1854_v60 = vadd.f32 %v4275_v57, %v1783_v56  ;;  %v4284_v44 = vadd.f32 %v1160_v45, %v4145_v0  ;;  %v1782_v52 = vadd.f32 %v1463_v43, %v4161_v8 }
 0x139   : > { %v2961_v41 = vpop.f32.mrf.mxu1  ;;  %v3031_v38 = vpop.f32.mrf.mxu0 }
 0x13a   : > { %v1853_v36 = vadd.f32 %v4275_v57, %v1782_v52  ;;  %v4289_v34 = vadd.f32 %v2961_v41, %v4152_v3  ;;  %v1785_v47 = vadd.f32 %v3031_v38, %v4166_v16  ;;  %v1918_v54 = vmax.f32 %v1854_v60, 0.0 }
 0x13b   : > { %v1170_v62 = vpop.f32.mrf.mxu1  ;;  %v1473_v6 = vpop.f32.mrf.mxu0 }
 0x13c   : > { %v1917_v31 = vmax.f32 %v1853_v36, 0.0  ;;  %v4293_v56 = vadd.f32 %v1170_v62, %v4158_v10  ;;  %v1784_v45 = vadd.f32 %v1473_v6, %v4174_v19  ;;  %v1856_v43 = vadd.f32 %v4275_v57, %v1785_v47 }
 0x13d   : > { %v2964_v0 = vpop.f32.mrf.mxu1  ;;  %v3034_v8 = vpop.f32.mrf.mxu0 }
 0x13e   : > { %v1981_v27 = vadd.f32 %v1918_v54, %v1917_v31  ;;  %v1855_v52 = vadd.f32 %v4275_v57, %v1784_v45  ;;  %v4299_v41 = vadd.f32 %v2964_v0, %v4163_v12  ;;  %v1787_v38 = vadd.f32 %v3034_v8, %v4180_v29 }
 0x13f   : > { %v1180_v3 = vpop.f32.mrf.mxu1  ;;  %v1483_v16 = vpop.f32.mrf.mxu0  ;;  %v1920_v60 = vmax.f32 %v1856_v43, 0.0 }
 0x140   : > { %v1919_v36 = vmax.f32 %v1855_v52, 0.0  ;;  %v4303_v10 = vadd.f32 %v1180_v3, %v4168_v5  ;;  %v1786_v19 = vadd.f32 %v1483_v16, %v4185_v39  ;;  %v1858_v47 = vadd.f32 %v4275_v57, %v1787_v38 }
 0x141   : > { %v2967_v62 = vpop.f32.mrf.mxu1  ;;  %v3037_v31 = vpop.f32.mrf.mxu0 }
 0x142   : > { %v1982_v6 = vadd.f32 %v1981_v27, %v1919_v36  ;;  %v1857_v54 = vadd.f32 %v4275_v57, %v1786_v19  ;;  %v4309_v12 = vadd.f32 %v2967_v62, %v4176_v28  ;;  %v1789_v29 = vadd.f32 %v3037_v31, %v4190_v22  ;;  %v2065_v27 = vld [vmem:[%s4678_s3 + $0x10] sm:$0xff]  ;;  %v2064_v28 = vld [vmem:[%s4678_s3 + $0x8] sm:$0xff] }
 0x143   : > { %v1190_v45 = vpop.f32.mrf.mxu1  ;;  %v1493_v0 = vpop.f32.mrf.mxu0  ;;  %v1922_v22 = vmax.f32 %v1858_v47, 0.0  ;;  %3149 = vmatpush3.msra.mxu1 %v2065_v27 }
 0x144   : > { %v1921_v8 = vmax.f32 %v1857_v54, 0.0  ;;  %v1983_v5 = vadd.f32 %v1982_v6, %v1920_v60  ;;  %v4313_v52 = vadd.f32 %v1190_v45, %v4182_v20  ;;  %v1788_v39 = vadd.f32 %v1493_v0, %v4198_v11  ;;  %3150 = vmatprep.subr.mxu1 %v4709_v13 }
 0x145   : > { %v2970_v43 = vpop.f32.mrf.mxu1  ;;  %v3040_v38 = vpop.f32.mrf.mxu0  ;;  %v1860_v11 = vadd.f32 %v4275_v57, %v1789_v29  ;;  %3151 = vmatpush3.msra.mxu1 %v2064_v28 }
 0x146   : > { %v1984_v3 = vadd.f32 %v1983_v5, %v1921_v8  ;;  %v4323_v16 = vadd.f32 %v2970_v43, %v4187_v58  ;;  %v1791_v20 = vadd.f32 %v3040_v38, %v4204_v9  ;;  %v1859_v36 = vadd.f32 %v4275_v57, %v1788_v39  ;;  %v2063_v58 = vld [vmem:[%s4678_s3] sm:$0xff]  ;;  %3152 = vmatprep.subr.mxu1 %v4709_v13 }
 0x147   : > { %v1200_v19 = vpop.f32.mrf.mxu1  ;;  %v1503_v60 = vpop.f32.mrf.mxu0  ;;  %3153 = vmatpush3.msra.mxu1 %v2063_v58  ;;  %v1924_v8 = vmax.f32 %v1860_v11, 0.0 }
 0x148   : > { %v1985_v47 = vadd.f32 %v1984_v3, %v1922_v22  ;;  %v4335_v9 = vadd.f32 %v1200_v19, %v4192_v2  ;;  %v1790_v62 = vadd.f32 %v1503_v60, %v4209_v17  ;;  %v1923_v31 = vmax.f32 %v1859_v36, 0.0  ;;  %3157 = vmatprep.subr.mxu1 %v4709_v13 }
 0x149   : > { %v2973_v6 = vpop.f32.mrf.mxu1  ;;  %v3043_v54 = vpop.f32.mrf.mxu0  ;;  %v1862_v2 = vadd.f32 %v4275_v57, %v1791_v20 }
 0x14a   : > { %v1861_v29 = vadd.f32 %v4275_v57, %v1790_v62  ;;  %v4341_v45 = vadd.f32 %v2973_v6, %v4200_v14  ;;  %v1793_v0 = vadd.f32 %v3043_v54, %v4214_v33  ;;  %v1986_v5 = vadd.f32 %v1985_v47, %v1923_v31 }
 0x14b   : > { %v1210_v39 = vpop.f32.mrf.mxu1  ;;  %v1513_v17 = vpop.f32.mrf.mxu0  ;;  %v1926_v11 = vmax.f32 %v1862_v2, 0.0 }
 0x14c   : > { %v1925_v43 = vmax.f32 %v1861_v29, 0.0  ;;  %v4347_v38 = vadd.f32 %v1210_v39, %v4206_v30  ;;  %v1792_v27 = vadd.f32 %v1513_v17, %v4222_v26  ;;  %v1987_v28 = vadd.f32 %v1986_v5, %v1924_v8 }
 0x14d   : > { %v4350_v14 = vpop.f32.mrf.mxu1  ;;  %v3046_v22 = vpop.f32.mrf.mxu0  ;;  %v1864_v36 = vadd.f32 %v4275_v57, %v1793_v0 }
 0x14e   : > { %v1863_v33 = vadd.f32 %v4275_v57, %v1792_v27  ;;  %v1795_v3 = vadd.f32 %v3046_v22, %v4228_v1  ;;  %v1988_v20 = vadd.f32 %v1987_v28, %v1925_v43 }
 0x14f   : > { %v4355_v19 = vpop.f32.mrf.mxu1  ;;  %v1523_v60 = vpop.f32.mrf.mxu0  ;;  %v1928_v54 = vmax.f32 %v1864_v36, 0.0 }
 0x150   : > { %v1927_v58 = vmax.f32 %v1863_v33, 0.0  ;;  %v1794_v30 = vadd.f32 %v1523_v60, %v4233_v63  ;;  %v1989_v47 = vadd.f32 %v1988_v20, %v1926_v11  ;;  %v1866_v29 = vadd.f32 %v4275_v57, %v1795_v3 }
 0x151   : > { %v4358_v26 = vpop.f32.mrf.mxu1  ;;  %v3049_v62 = vpop.f32.mrf.mxu0 }
 0x152   : > { %v1865_v31 = vadd.f32 %v4275_v57, %v1794_v30  ;;  %v1797_v6 = vadd.f32 %v3049_v62, %v4238_v42  ;;  %v1990_v1 = vadd.f32 %v1989_v47, %v1927_v58  ;;  %v1930_v28 = vmax.f32 %v1866_v29, 0.0 }
 0x153   : > { %v4363_v8 = vpop.f32.mrf.mxu1  ;;  %v1533_v0 = vpop.f32.mrf.mxu0 }
 0x154   : > { %v1929_v5 = vmax.f32 %v1865_v31, 0.0  ;;  %v1796_v2 = vadd.f32 %v1533_v0, %v4246_v37  ;;  %v1991_v39 = vadd.f32 %v1990_v1, %v1928_v54  ;;  %v1868_v22 = vadd.f32 %v4275_v57, %v1797_v6 }
 0x155   : > { %v4366_v63 = vpop.f32.mrf.mxu1  ;;  %v3052_v17 = vpop.f32.mrf.mxu0 }
 0x156   : > { %v1867_v43 = vadd.f32 %v4275_v57, %v1796_v2  ;;  %v1799_v27 = vadd.f32 %v3052_v17, %v4252_v59  ;;  %v1992_v42 = vadd.f32 %v1991_v39, %v1929_v5  ;;  %v1932_v47 = vmax.f32 %v1868_v22, 0.0 }
 0x157   : > { %v4371_v33 = vpop.f32.mrf.mxu1  ;;  %v1543_v3 = vpop.f32.mrf.mxu0 }
 0x158   : > { %v1931_v11 = vmax.f32 %v1867_v43, 0.0  ;;  %v1798_v20 = vadd.f32 %v1543_v3, %v4257_v53  ;;  %v1993_v36 = vadd.f32 %v1992_v42, %v1930_v28  ;;  %v1870_v62 = vadd.f32 %v4275_v57, %v1799_v27 }
 0x159   : > { %v4374_v37 = vpop.f32.mrf.mxu1  ;;  %v3055_v60 = vpop.f32.mrf.mxu0 }
 0x15a   : > { %v1869_v58 = vadd.f32 %v4275_v57, %v1798_v20  ;;  %v1801_v30 = vadd.f32 %v3055_v60, %v4262_v50  ;;  %v1994_v59 = vadd.f32 %v1993_v36, %v1931_v11  ;;  %v1934_v39 = vmax.f32 %v1870_v62, 0.0 }
 0x15b   : > { %v4379_v31 = vpop.f32.mrf.mxu1  ;;  %v1553_v6 = vpop.f32.mrf.mxu0 }
 0x15c   : > { %v1933_v54 = vmax.f32 %v1869_v58, 0.0  ;;  %v1800_v1 = vadd.f32 %v1553_v6, %v4270_v46  ;;  %v1995_v29 = vadd.f32 %v1994_v59, %v1932_v47  ;;  %v1872_v17 = vadd.f32 %v4275_v57, %v1801_v30 }
 0x15d   : > { %v4382_v53 = vpop.f32.mrf.mxu1  ;;  %v3058_v0 = vpop.f32.mrf.mxu0 }
 0x15e   : > { %v1871_v5 = vadd.f32 %v4275_v57, %v1800_v1  ;;  %v1803_v2 = vadd.f32 %v3058_v0, %v4279_v49  ;;  %v1996_v50 = vadd.f32 %v1995_v29, %v1933_v54  ;;  %v1936_v36 = vmax.f32 %v1872_v17, 0.0 }
 0x15f   : > { %v4387_v43 = vpop.f32.mrf.mxu1  ;;  %v1563_v27 = vpop.f32.mrf.mxu0 }
 0x160   : > { %v1935_v28 = vmax.f32 %v1871_v5, 0.0  ;;  %v1802_v42 = vadd.f32 %v1563_v27, %v4284_v44  ;;  %v1997_v22 = vadd.f32 %v1996_v50, %v1934_v39  ;;  %v1874_v60 = vadd.f32 %v4275_v57, %v1803_v2 }
 0x161   : > { %v4390_v46 = vpop.f32.mrf.mxu1  ;;  %v3061_v3 = vpop.f32.mrf.mxu0 }
 0x162   : > { %v1873_v11 = vadd.f32 %v4275_v57, %v1802_v42  ;;  %v1805_v20 = vadd.f32 %v3061_v3, %v4289_v34  ;;  %v1998_v49 = vadd.f32 %v1997_v22, %v1935_v28  ;;  %v1938_v29 = vmax.f32 %v1874_v60, 0.0 }
 0x163   : > { %v4395_v58 = vpop.f32.mrf.mxu1  ;;  %v1573_v30 = vpop.f32.mrf.mxu0 }
 0x164   : > { %v1937_v47 = vmax.f32 %v1873_v11, 0.0  ;;  %v1804_v59 = vadd.f32 %v1573_v30, %v4293_v56  ;;  %v1999_v62 = vadd.f32 %v1998_v49, %v1936_v36  ;;  %v1876_v0 = vadd.f32 %v4275_v57, %v1805_v20 }
 0x165   : > { %v4398_v44 = vpop.f32.mrf.mxu1  ;;  %v3064_v6 = vpop.f32.mrf.mxu0 }
 0x166   : > { %v1875_v54 = vadd.f32 %v4275_v57, %v1804_v59  ;;  %v1807_v1 = vadd.f32 %v3064_v6, %v4299_v41  ;;  %v2000_v34 = vadd.f32 %v1999_v62, %v1937_v47  ;;  %v1940_v42 = vmax.f32 %v1876_v0, 0.0 }
 0x167   : > { %v4403_v5 = vpop.f32.mrf.mxu1  ;;  %v1583_v2 = vpop.f32.mrf.mxu0 }
 0x168   : > { %v1939_v39 = vmax.f32 %v1875_v54, 0.0  ;;  %v1806_v50 = vadd.f32 %v1583_v2, %v4303_v10  ;;  %v2001_v17 = vadd.f32 %v2000_v34, %v1938_v29  ;;  %v1878_v41 = vadd.f32 %v4275_v57, %v1807_v1 }
 0x169   : > { %v3067_v56 = vpop.f32.mrf.mxu0  ;;  %v4409_v3 = vpop.f32.mrf.mxu1 }
 0x16a   : > { %v1877_v27 = vadd.f32 %v4275_v57, %v1806_v50  ;;  %v1809_v28 = vadd.f32 %v3067_v56, %v4309_v12  ;;  %v2002_v22 = vadd.f32 %v2001_v17, %v1939_v39  ;;  %v1942_v47 = vmax.f32 %v1878_v41, 0.0 }
 0x16b   : > { %v1593_v11 = vpop.f32.mrf.mxu0  ;;  %v4415_v62 = vpop.f32.mrf.mxu1  ;;  %v1226_v56 = vadd.f32 %v4350_v14, %v4211_v32  ;;  %v1236_v32 = vadd.f32 %v4358_v26, %v4224_v7  ;;  %v1246_v26 = vadd.f32 %v4366_v63, %v4235_v61  ;;  %v1256_v61 = vadd.f32 %v4374_v37, %v4248_v55 }
 0x16c   : > { %v1941_v20 = vmax.f32 %v1877_v27, 0.0  ;;  %v1808_v36 = vadd.f32 %v1593_v11, %v4313_v52  ;;  %v2003_v49 = vadd.f32 %v2002_v22, %v1940_v42  ;;  %v1880_v12 = vadd.f32 %v4275_v57, %v1809_v28 }
 0x16d   : > { %v3070_v60 = vpop.f32.mrf.mxu0  ;;  %v4420_v50 = vpop.f32.mrf.mxu1  ;;  %v1221_v22 = vadd.f32 %v4355_v19, %v4216_v4  ;;  %v1231_v4 = vadd.f32 %v4363_v8, %v4230_v40  ;;  %v1241_v40 = vadd.f32 %v4371_v33, %v4240_v24  ;;  %v1251_v33 = vadd.f32 %v4379_v31, %v4254_v48 }
 0x16e   : > { %v1879_v10 = vadd.f32 %v4275_v57, %v1808_v36  ;;  %v1811_v30 = vadd.f32 %v3070_v60, %v4323_v16  ;;  %v2004_v59 = vadd.f32 %v2003_v49, %v1941_v20  ;;  %v1944_v2 = vmax.f32 %v1880_v12, 0.0 }
 0x16f   : > { %v1603_v6 = vpop.f32.mrf.mxu0  ;;  %v4429_v20 = vpop.f32.mrf.mxu1 }
 0x170   : > { %v1943_v54 = vmax.f32 %v1879_v10, 0.0  ;;  %v1810_v1 = vadd.f32 %v1603_v6, %v4335_v9  ;;  %v2005_v29 = vadd.f32 %v2004_v59, %v1942_v47  ;;  %v1882_v16 = vadd.f32 %v4275_v57, %v1811_v30 }
 0x171   : > { %v3073_v34 = vpop.f32.mrf.mxu0  ;;  %v4438_v12 = vpop.f32.mrf.mxu1 }
 0x172   : > { %v1881_v52 = vadd.f32 %v4275_v57, %v1810_v1  ;;  %v1813_v0 = vadd.f32 %v3073_v34, %v4341_v45  ;;  %v2006_v39 = vadd.f32 %v2005_v29, %v1943_v54  ;;  %v1946_v11 = vmax.f32 %v1882_v16, 0.0 }
 0x173   : > { %v1613_v17 = vpop.f32.mrf.mxu0  ;;  %v4448_v16 = vpop.f32.mrf.mxu1 }
 0x174   : > { %v1945_v27 = vmax.f32 %v1881_v52, 0.0  ;;  %v1812_v28 = vadd.f32 %v1613_v17, %v4347_v38  ;;  %v2007_v9 = vadd.f32 %v2006_v39, %v1944_v2  ;;  %v1884_v49 = vadd.f32 %v4275_v57, %v1813_v0 }
 0x175   : > { %v3076_v42 = vpop.f32.mrf.mxu0 }
 0x176   : > { %v1883_v45 = vadd.f32 %v4275_v57, %v1812_v28  ;;  %v1815_v41 = vadd.f32 %v3076_v42, %v1226_v56  ;;  %v2008_v36 = vadd.f32 %v2007_v9, %v1945_v27  ;;  %v1948_v6 = vmax.f32 %v1884_v49, 0.0 }
 0x177   : > { %v1623_v60 = vpop.f32.mrf.mxu0 }
 0x178   : > { %v1947_v14 = vmax.f32 %v1883_v45, 0.0  ;;  %v1886_v38 = vadd.f32 %v4275_v57, %v1815_v41  ;;  %v1814_v10 = vadd.f32 %v1623_v60, %v1221_v22  ;;  %v2009_v30 = vadd.f32 %v2008_v36, %v1946_v11  ;;  %v4456_v45 = vpop.f32.mrf.mxu1 }
 0x179   : > { %v3079_v47 = vpop.f32.mrf.mxu0  ;;  %v1266_v60 = vadd.f32 %v4382_v53, %v4259_v51  ;;  %v1276_v51 = vadd.f32 %v4390_v46, %v4025_v15  ;;  %v1286_v15 = vadd.f32 %v4398_v44, %v4040_v21  ;;  %v1296_v21 = vadd.f32 %v4409_v3, %v4053_v25 }
 0x17a   : > { %v1885_v19 = vadd.f32 %v4275_v57, %v1814_v10  ;;  %v1817_v59 = vadd.f32 %v3079_v47, %v1236_v32  ;;  %v2010_v54 = vadd.f32 %v2009_v30, %v1947_v14  ;;  %v1950_v29 = vmax.f32 %v1886_v38, 0.0  ;;  %v4462_v10 = vpop.f32.mrf.mxu1 }
 0x17b   : > { %v1633_v1 = vpop.f32.mrf.mxu0  ;;  %v1261_v32 = vadd.f32 %v4387_v43, %v4264_v35  ;;  %v1271_v35 = vadd.f32 %v4395_v58, %v4033_v18  ;;  %v1281_v18 = vadd.f32 %v4403_v5, %v4049_v23 }
 0x17c   : > { %v1949_v34 = vmax.f32 %v1885_v19, 0.0  ;;  %v1816_v7 = vadd.f32 %v1633_v1, %v1231_v4  ;;  %v4442_v52 = vadd.f32 %v2010_v54, %v1948_v6  ;;  %v1888_v2 = vadd.f32 %v4275_v57, %v1817_v59  ;;  %v4471_v6 = vpop.f32.mrf.mxu1 }
 0x17d   : > { %v3082_v0 = vpop.f32.mrf.mxu0 }
 0x17e   : > { %v2018_v8 = vadd.f32 %v1950_v29, %v1949_v34  ;;  %v1887_v39 = vadd.f32 %v4275_v57, %v1816_v7  ;;  %v1819_v17 = vadd.f32 %v3082_v0, %v1246_v26  ;;  %v1952_v9 = vmax.f32 %v1888_v2, 0.0 }
 0x17f   : > { %v1643_v56 = vpop.f32.mrf.mxu0 }
 0x180   : > { %v1951_v27 = vmax.f32 %v1887_v39, 0.0  ;;  %v1818_v28 = vadd.f32 %v1643_v56, %v1241_v40  ;;  %v1890_v22 = vadd.f32 %v4275_v57, %v1819_v17 }
 0x181   : > { %v3085_v63 = vpop.f32.mrf.mxu0 }
 0x182   : > { %v2019_v42 = vadd.f32 %v2018_v8, %v1951_v27  ;;  %v1889_v24 = vadd.f32 %v4275_v57, %v1818_v28  ;;  %v1821_v41 = vadd.f32 %v3085_v63, %v1256_v61  ;;  %v1954_v14 = vmax.f32 %v1890_v22, 0.0  ;;  %v4479_v8 = vpop.f32.mrf.mxu1 }
 0x183   : > { %v1653_v11 = vpop.f32.mrf.mxu0 }
 0x184   : > { %v1953_v36 = vmax.f32 %v1889_v24, 0.0  ;;  %v2020_v49 = vadd.f32 %v2019_v42, %v1952_v9  ;;  %v1820_v55 = vadd.f32 %v1653_v11, %v1251_v33  ;;  %v1892_v48 = vadd.f32 %v4275_v57, %v1821_v41  ;;  %v4710_v9 = vld [vmem:[#allocation8_spill] sm:$0xff]  ;;  %v3012_v42 = vpop.f32.mrf.mxu1 }
 0x185   : > { %v3088_v37 = vpop.f32.mrf.mxu0  ;;  %v1291_v23 = vadd.f32 %v4415_v62, %v4710_v9 }
 0x186   : > { %v2021_v38 = vadd.f32 %v2020_v49, %v1953_v36  ;;  %v1891_v31 = vadd.f32 %v4275_v57, %v1820_v55  ;;  %v1823_v30 = vadd.f32 %v3088_v37, %v1266_v60  ;;  %v1956_v54 = vmax.f32 %v1892_v48, 0.0  ;;  %v4711_v60 = vld [vmem:[#allocation9_spill] sm:$0xff]  ;;  %v4712_v37 = vld [vmem:[#allocation10_spill] sm:$0xff] }
 0x187   : > { %v1663_v47 = vpop.f32.mrf.mxu0  ;;  %v1306_v55 = vadd.f32 %v4420_v50, %v4711_v60 }
 0x188   : > { %v2022_v4 = vadd.f32 %v2021_v38, %v1954_v14  ;;  %v1822_v19 = vadd.f32 %v1663_v47, %v1261_v32  ;;  %v1955_v53 = vmax.f32 %v1891_v31, 0.0  ;;  %v1894_v29 = vadd.f32 %v4275_v57, %v1823_v30  ;;  %v1340_v14 = vpop.f32.mrf.mxu1 }
 0x189   : > { %v3091_v59 = vpop.f32.mrf.mxu0  ;;  %v1301_v32 = vadd.f32 %v4429_v20, %v4712_v37 }
 0x18a   : > { %v1893_v43 = vadd.f32 %v4275_v57, %v1822_v19  ;;  %v2023_v1 = vadd.f32 %v2022_v4, %v1955_v53  ;;  %v1825_v34 = vadd.f32 %v3091_v59, %v1276_v51  ;;  %v1958_v2 = vmax.f32 %v1894_v29, 0.0  ;;  %v4713_v51 = vld [vmem:[#allocation11_spill] sm:$0xff] }
 0x18b   : > { %v1673_v7 = vpop.f32.mrf.mxu0  ;;  %v1316_v53 = vadd.f32 %v4438_v12, %v4713_v51 }
 0x18c   : > { %v1957_v26 = vmax.f32 %v1893_v43, 0.0  ;;  %v1824_v0 = vadd.f32 %v1673_v7, %v1271_v35  ;;  %v2024_v46 = vadd.f32 %v2023_v1, %v1956_v54  ;;  %v1896_v17 = vadd.f32 %v4275_v57, %v1825_v34  ;;  %v4714_v35 = vld [vmem:[#allocation12_spill] sm:$0xff]  ;;  %v3015_v54 = vpop.f32.mrf.mxu1 }
 0x18d   : > { %v3094_v40 = vpop.f32.mrf.mxu0  ;;  %v1311_v43 = vadd.f32 %v4448_v16, %v4714_v35 }
 0x18e   : > { %v1895_v58 = vadd.f32 %v4275_v57, %v1824_v0  ;;  %v2025_v39 = vadd.f32 %v2024_v46, %v1957_v26  ;;  %v1827_v56 = vadd.f32 %v3094_v40, %v1286_v15  ;;  %v1960_v22 = vmax.f32 %v1896_v17, 0.0  ;;  %v4715_v46 = vld [vmem:[#allocation13_spill] sm:$0xff] }
 0x18f   : > { %v1683_v27 = vpop.f32.mrf.mxu0  ;;  %v1326_v40 = vadd.f32 %v4456_v45, %v4715_v46  ;;  %v4723_v46 = vld [vmem:[#allocation21_spill] sm:$0xff] }
 0x190   : > { %v1959_v28 = vmax.f32 %v1895_v58, 0.0  ;;  %v1826_v61 = vadd.f32 %v1683_v27, %v1281_v18  ;;  %v2026_v44 = vadd.f32 %v2025_v39, %v1958_v2  ;;  %v1898_v33 = vadd.f32 %v4275_v57, %v1827_v56  ;;  %v4716_v58 = vld [vmem:[#allocation14_spill] sm:$0xff]  ;;  %v1350_v39 = vpop.f32.mrf.mxu1 }
 0x191   : > { %v3097_v63 = vpop.f32.mrf.mxu0  ;;  %v1321_v2 = vadd.f32 %v4462_v10, %v4716_v58 }
 0x192   : > { %v1897_v5 = vadd.f32 %v4275_v57, %v1826_v61  ;;  %v2027_v24 = vadd.f32 %v2026_v44, %v1959_v28  ;;  %v1829_v41 = vadd.f32 %v3097_v63, %v1296_v21  ;;  %v1962_v38 = vmax.f32 %v1898_v33, 0.0  ;;  %v4717_v63 = vld [vmem:[#allocation15_spill] sm:$0xff] }
 0x193   : > { %v1693_v11 = vpop.f32.mrf.mxu0  ;;  %v1336_v9 = vadd.f32 %v4471_v6, %v4717_v63 }
 0x194   : > { %v1961_v36 = vmax.f32 %v1897_v5, 0.0  ;;  %v1828_v49 = vadd.f32 %v1693_v11, %v1291_v23  ;;  %v2028_v25 = vadd.f32 %v2027_v24, %v1960_v22  ;;  %v1900_v31 = vadd.f32 %v4275_v57, %v1829_v41  ;;  %v4718_v5 = vld [vmem:[#allocation16_spill] sm:$0xff]  ;;  %v3018_v24 = vpop.f32.mrf.mxu1 }
 0x195   : > { %v3100_v3 = vpop.f32.mrf.mxu0  ;;  %v1331_v22 = vadd.f32 %v4479_v8, %v4718_v5  ;;  %v4726_v5 = vld [vmem:[#allocation24_spill] sm:$0xff] }
 0x196   : > { %v1899_v62 = vadd.f32 %v4275_v57, %v1828_v49  ;;  %v2029_v48 = vadd.f32 %v2028_v25, %v1961_v36  ;;  %v1831_v30 = vadd.f32 %v3100_v3, %v1306_v55  ;;  %v1964_v1 = vmax.f32 %v1900_v31, 0.0  ;;  %v4719_v25 = vld [vmem:[#allocation17_spill] sm:$0xff]  ;;  %v1360_v8 = vpop.f32.mrf.mxu1 }
 0x197   : > { %v1703_v47 = vpop.f32.mrf.mxu0  ;;  %v1346_v3 = vadd.f32 %v3012_v42, %v4719_v25  ;;  %v4722_v42 = vld [vmem:[#allocation20_spill] sm:$0xff] }
 0x198   : > { %v1963_v4 = vmax.f32 %v1899_v62, 0.0  ;;  %v1830_v19 = vadd.f32 %v1703_v47, %v1301_v32  ;;  %v2030_v50 = vadd.f32 %v2029_v48, %v1962_v38  ;;  %v1902_v34 = vadd.f32 %v4275_v57, %v1831_v30  ;;  %v4720_v32 = vld [vmem:[#allocation18_spill] sm:$0xff] }
 0x199   : > { %v3103_v59 = vpop.f32.mrf.mxu0  ;;  %v1341_v62 = vadd.f32 %v1340_v14, %v4720_v32  ;;  %v3021_v14 = vpop.f32.mrf.mxu1 }
 0x19a   : > { %v1901_v20 = vadd.f32 %v4275_v57, %v1830_v19  ;;  %v2031_v29 = vadd.f32 %v2030_v50, %v1963_v4  ;;  %v1833_v7 = vadd.f32 %v3103_v59, %v1316_v53  ;;  %v1966_v17 = vmax.f32 %v1902_v34, 0.0  ;;  %v4721_v53 = vld [vmem:[#allocation19_spill] sm:$0xff] }
 0x19b   : > { %v1713_v26 = vpop.f32.mrf.mxu0  ;;  %v1356_v50 = vadd.f32 %v3015_v54, %v4721_v53  ;;  %v4724_v54 = vld [vmem:[#allocation22_spill] sm:$0xff] }
 0x19c   : > { %v1965_v0 = vmax.f32 %v1901_v20, 0.0  ;;  %v1832_v15 = vadd.f32 %v1713_v26, %v1311_v43  ;;  %v2032_v12 = vadd.f32 %v2031_v29, %v1964_v1  ;;  %v1904_v27 = vadd.f32 %v4275_v57, %v1833_v7 }
 0x19d   : > { %v3106_v18 = vpop.f32.mrf.mxu0  ;;  %v1351_v43 = vadd.f32 %v1350_v39, %v4722_v42  ;;  %v1361_v58 = vadd.f32 %v1360_v8, %v4724_v54  ;;  %v2159_v54 = vld [vmem:[%s4680_s5 + $0x10] sm:$0xff] }
 0x19e   : > { %v1903_v16 = vadd.f32 %v4275_v57, %v1832_v15  ;;  %v2033_v56 = vadd.f32 %v2032_v12, %v1965_v0  ;;  %v1835_v28 = vadd.f32 %v3106_v18, %v1326_v40  ;;  %v1968_v33 = vmax.f32 %v1904_v27, 0.0 }
 0x19f   : > { %v1723_v61 = vpop.f32.mrf.mxu0  ;;  %v1366_v40 = vadd.f32 %v3018_v24, %v4723_v46  ;;  %v2163_v46 = vld [vmem:[%s4680_s5 + $0x30] sm:$0xff] }
 0x1a0   : > { %v1967_v21 = vmax.f32 %v1903_v16, 0.0  ;;  %v1834_v44 = vadd.f32 %v1723_v61, %v1321_v2  ;;  %v2034_v45 = vadd.f32 %v2033_v56, %v1966_v17  ;;  %v1906_v11 = vadd.f32 %v4275_v57, %v1835_v28  ;;  %v1370_v16 = vpop.f32.mrf.mxu1 }
 0x1a1   : > { %v3109_v23 = vpop.f32.mrf.mxu0 }
 0x1a2   : > { %v1905_v10 = vadd.f32 %v4275_v57, %v1834_v44  ;;  %v2035_v41 = vadd.f32 %v2034_v45, %v1967_v21  ;;  %v1837_v36 = vadd.f32 %v3109_v23, %v1336_v9  ;;  %v1970_v48 = vmax.f32 %v1906_v11, 0.0  ;;  %v4725_v44 = vld [vmem:[#allocation23_spill] sm:$0xff] }
 0x1a3   : > { %v1733_v49 = vpop.f32.mrf.mxu0  ;;  %v1376_v63 = vadd.f32 %v3021_v14, %v4725_v44  ;;  %v2012_v23 = vrot.slane %v4442_v52, 4  ;;  %v2171_v14 = vld [vmem:[%s4680_s5 + $0x70] sm:$0xff] }
 0x1a4   : > { %v1969_v60 = vmax.f32 %v1905_v10, 0.0  ;;  %v1836_v55 = vadd.f32 %v1733_v49, %v1331_v22  ;;  %v2036_v37 = vadd.f32 %v2035_v41, %v1968_v33  ;;  %v1908_v30 = vadd.f32 %v4275_v57, %v1837_v36 }
 0x1a5   : > { %v3112_v6 = vpop.f32.mrf.mxu0  ;;  %v1371_v22 = vadd.f32 %v1370_v16, %v4726_v5  ;;  %v2582_v16 = vld [vmem:[%s4679_s4] ss:$0 sm:$0xff] }
 0x1a6   : > { %v1907_v38 = vadd.f32 %v4275_v57, %v1836_v55  ;;  %v2037_v31 = vadd.f32 %v2036_v37, %v1969_v60  ;;  %v1839_v47 = vadd.f32 %v3112_v6, %v1346_v3  ;;  %v1972_v1 = vmax.f32 %v1908_v30, 0.0 }
 0x1a7   : > { %v1743_v4 = vpop.f32.mrf.mxu0  ;;  %v2013_v3 = vadd.f32 %v2012_v23, %v4442_v52 }
 0x1a8   : > { %v1971_v19 = vmax.f32 %v1907_v38, 0.0  ;;  %v1838_v51 = vadd.f32 %v1743_v4, %v1341_v62  ;;  %v2038_v59 = vadd.f32 %v2037_v31, %v1970_v48  ;;  %v1910_v34 = vadd.f32 %v4275_v57, %v1839_v47 }
 0x1a9   : > { %v3115_v35 = vpop.f32.mrf.mxu0  ;;  %v2014_v8 = vrot.slane %v2013_v3, 2 }
 0x1aa   : > { %v1909_v20 = vadd.f32 %v4275_v57, %v1838_v51  ;;  %v2039_v29 = vadd.f32 %v2038_v59, %v1971_v19  ;;  %v1841_v7 = vadd.f32 %v3115_v35, %v1356_v50  ;;  %v1974_v39 = vmax.f32 %v1910_v34, 0.0  ;;  %v2168_v34 = vld [vmem:[%s4680_s5 + $0x58] sm:$0xff] }
 0x1ab   : > { %v1753_v26 = vpop.f32.mrf.mxu0  ;;  %v2015_v47 = vadd.f32 %v2014_v8, %v2013_v3 }
 0x1ac   : > { %v1973_v0 = vmax.f32 %v1909_v20, 0.0  ;;  %v1840_v15 = vadd.f32 %v1753_v26, %v1351_v43  ;;  %v2040_v12 = vadd.f32 %v2039_v29, %v1972_v1  ;;  %v1912_v56 = vadd.f32 %v4275_v57, %v1841_v7  ;;  %v2172_v43 = vld [vmem:[%s4680_s5 + $0x78] sm:$0xff]  ;;  %v2170_v1 = vld [vmem:[%s4680_s5 + $0x68] sm:$0xff]  ;;  %v2169_v29 = vld [vmem:[%s4680_s5 + $0x60] sm:$0xff] }
 0x1ad   : > { %v3118_v18 = vpop.f32.mrf.mxu0  ;;  %v2016_v53 = vrot.slane %v2015_v47, 1  ;;  %v2167_v7 = vld [vmem:[%s4680_s5 + $0x50] sm:$0xff]  ;;  %v2166_v26 = vld [vmem:[%s4680_s5 + $0x48] sm:$0xff] }
 0x1ae   : > { %v1911_v2 = vadd.f32 %v4275_v57, %v1840_v15  ;;  %v2041_v17 = vadd.f32 %v2040_v12, %v1973_v0  ;;  %v1843_v27 = vadd.f32 %v3118_v18, %v1366_v40  ;;  %v1976_v24 = vmax.f32 %v1912_v56, 0.0  ;;  %v2165_v0 = vld [vmem:[%s4680_s5 + $0x40] sm:$0xff]  ;;  %v2164_v15 = vld [vmem:[%s4680_s5 + $0x38] sm:$0xff]  ;;  %v2162_v40 = vld [vmem:[%s4680_s5 + $0x28] sm:$0xff] }
 0x1af   : > { %v1763_v28 = vpop.f32.mrf.mxu0  ;;  %v2017_v52 = vadd.f32 %v2016_v53, %v2015_v47  ;;  %v2161_v12 = vld [vmem:[%s4680_s5 + $0x20] sm:$0xff]  ;;  %v2160_v18 = vld [vmem:[%s4680_s5 + $0x18] sm:$0xff] }
 0x1b0   : > { %v1975_v61 = vmax.f32 %v1911_v2, 0.0  ;;  %v1842_v21 = vadd.f32 %v1763_v28, %v1361_v58  ;;  %v2042_v9 = vadd.f32 %v2041_v17, %v1974_v39  ;;  %v1914_v41 = vadd.f32 %v4275_v57, %v1843_v27  ;;  %v2158_v58 = vld [vmem:[%s4680_s5 + $0x8] sm:$0xff]  ;;  %v2157_v2 = vld [vmem:[%s4680_s5] sm:$0xff] }
 0x1b1   : > { %v3121_v45 = vpop.f32.mrf.mxu0  ;;  %v2055_v35 = vmul.f32 0.00390625, %v2017_v52 }
 0x1b2   : > { %v1913_v10 = vadd.f32 %v4275_v57, %v1842_v21  ;;  %v2043_v33 = vadd.f32 %v2042_v9, %v1975_v61  ;;  %v1845_v11 = vadd.f32 %v3121_v45, %v1376_v63  ;;  %v1978_v37 = vmax.f32 %v1914_v41, 0.0 }
 0x1b3   : > { %v1773_v36 = vpop.f32.mrf.mxu0 }
 0x1b4   : > { %v1977_v49 = vmax.f32 %v1913_v10, 0.0  ;;  %v1844_v60 = vadd.f32 %v1773_v36, %v1371_v22  ;;  %v2044_v55 = vadd.f32 %v2043_v33, %v1976_v24  ;;  %v1916_v32 = vadd.f32 %v4275_v57, %v1845_v11 }
 0x1b6   : > { %v1915_v25 = vadd.f32 %v4275_v57, %v1844_v60  ;;  %v2045_v6 = vadd.f32 %v2044_v55, %v1977_v49  ;;  %v1980_v48 = vmax.f32 %v1916_v32, 0.0 }
 0x1b8   : > { %v1979_v62 = vmax.f32 %v1915_v25, 0.0  ;;  %v2046_v38 = vadd.f32 %v2045_v6, %v1978_v37 }
 0x1ba   : > { %v2047_v31 = vadd.f32 %v2046_v38, %v1979_v62 }
 0x1bc   : > { %v2048_v30 = vadd.f32 %v2047_v31, %v1980_v48 }
 0x1be   : > { %v2049_v4 = vrot.slane %v2048_v30, 4 }
 0x1c0   : > { %v2050_v19 = vadd.f32 %v2049_v4, %v2048_v30 }
 0x1c2   : > { %v2051_v51 = vrot.slane %v2050_v19, 2 }
 0x1c4   : > { %v2052_v50 = vadd.f32 %v2051_v51, %v2050_v19 }
 0x1c6   : > { %v2053_v59 = vrot.slane %v2052_v50, 1 }
 0x1c8   : > { %v2054_v57 = vadd.f32 %v2053_v59, %v2052_v50 }
 0x1ca   : > { %v2056_v42 = vmul.f32 0.00390625, %v2054_v57 }
 0x1cc   : > { %v2060_v20 = vsel %vm2059_vm3, %v2056_v42, %v2055_v35 }
 0x1cd   : > { %3155 = vmatmul.mubr.f32.vlgmr.msra.gmra.mxu1 %v2060_v20  ;;  %2062 = vst [vmem:[%s4544_s22] sm:$0x3] %v2060_v20 }
 0x1ce   : > { %3158 = vmatpush3.msra.mxu1 %v2172_v43  ;;  %3189 = vmatprep.mubr.msk.f32.mxu1 %vm3336_vm2, %v4709_v13 }
 0x1cf   : > { %3159 = vmatprep.subr.mxu1 %v4709_v13 }
 0x1d0   : > { %3160 = vmatpush3.msra.mxu1 %v2171_v14 }
 0x1d1   : > { %3161 = vmatprep.subr.mxu1 %v4709_v13 }
 0x1d2   : > { %3162 = vmatpush3.msra.mxu1 %v2170_v1 }
 0x1d3   : > { %3163 = vmatprep.subr.mxu1 %v4709_v13 }
 0x1d4   : > { %3164 = vmatpush3.msra.mxu1 %v2169_v29 }
 0x1d5   : > { %3165 = vmatprep.subr.mxu1 %v4709_v13 }
 0x1d6   : > { %3166 = vmatpush3.msra.mxu1 %v2168_v34 }
 0x1d7   : > { %3167 = vmatprep.subr.mxu1 %v4709_v13 }
 0x1d8   : > { %3168 = vmatpush3.msra.mxu1 %v2167_v7 }
 0x1d9   : > { %3169 = vmatprep.subr.mxu1 %v4709_v13 }
 0x1da   : > { %3170 = vmatpush3.msra.mxu1 %v2166_v26 }
 0x1db   : > { %3171 = vmatprep.subr.mxu1 %v4709_v13 }
 0x1dc   : > { %3172 = vmatpush3.msra.mxu1 %v2165_v0 }
 0x1dd   : > { %3173 = vmatprep.subr.mxu1 %v4709_v13 }
 0x1de   : > { %3174 = vmatpush3.msra.mxu1 %v2164_v15 }
 0x1df   : > { %3175 = vmatprep.subr.mxu1 %v4709_v13 }
 0x1e0   : > { %3176 = vmatpush3.msra.mxu1 %v2163_v46 }
 0x1e1   : > { %3177 = vmatprep.subr.mxu1 %v4709_v13 }
 0x1e2   : > { %3178 = vmatpush3.msra.mxu1 %v2162_v40 }
 0x1e3   : > { %3179 = vmatprep.subr.mxu1 %v4709_v13 }
 0x1e4   : > { %3180 = vmatpush3.msra.mxu1 %v2161_v12 }
 0x1e5   : > { %3181 = vmatprep.subr.mxu1 %v4709_v13 }
 0x1e6   : > { %3182 = vmatpush3.msra.mxu1 %v2160_v18 }
 0x1e7   : > { %3183 = vmatprep.subr.mxu1 %v4709_v13 }
 0x1e8   : > { %3184 = vmatpush3.msra.mxu1 %v2159_v54 }
 0x1e9   : > { %3185 = vmatprep.subr.mxu1 %v4709_v13 }
 0x1ea   : > { %3186 = vmatpush3.msra.mxu1 %v2158_v58 }
 0x1eb   : > { %3187 = vmatprep.subr.mxu1 %v4709_v13 }
 0x1ec   : > { %3188 = vmatpush3.msra.mxu1 %v2157_v2 }
 0x28d   : > { %v2152_v39 = vpop.f32.mrf.mxu1 }
 0x28e   : > { %v2153_v17 = vadd.f32 %v2582_v16, %v2152_v39 }
 0x28f   : > { %v3156_v56 = vpop.f32.mrf.mxu1 }
 0x290   : > { %v2156_v27 = vmax.f32 %v2153_v17, 0.0 }
 0x292   : > { %3190 = vmatmul.mubr.f32.vlgmr.msra.gmra.mxu1 %v2156_v27 }
 0x293   : > { %3256 = shalt.err (!%p3253_p3)
}
 0x294   : > { %s3257_s22 = scalar_lea.hbm %s2268_s10, 32  ;;  %s3261_s23 = scalar_lea.hbm %s4682_s7, 64 }
 0x295   : > { %p3258_p4 = scmp.ne.s32.totalorder %s2268_s10, %s3257_s22  ;;  %p3262_p9 = scmp.lt.s32.totalorder %s2268_s10, %s4682_s7 }
 0x296   : > { %p3263_p10 = scmp.lt.s32.totalorder %s3261_s23, %s3257_s22 }
 0x297   : > { %p3259_p7 = pnand %p3258_p4, %p3422_p5 }
 0x298   : > { %p3264_p11 = por %p3263_p10, %p3262_p9 }
 0x299   : > { %p3260_p8 = pneg %p3259_p7 }
 0x29b   : > { %p3265_p12 = pnand %p3264_p11, %p3260_p8 }
 0x29d   : > { %3268 = shalt.err (!%p3265_p12)
}
 0x29e   : > { %3197 = dma.vmem_to_hbm [thread:$0]  (%p3422_p5), %s2271_s24, 32, %s2268_s10, %s2252_s12   ;;  %v2583_v13 = vld [vmem:[%s4681_s6] ss:$0 sm:$0xff] }
 0x29f   : > { %s4727_s20 = sshll.u32 %s4533_s17, 1  ;;  %s4728_s0 = sshll.u32 %s3405_s9, 5 }
 0x2a0   : > { %s312_s21 = scalar_lea.vmem [#allocation4], %s4727_s20  ;;  %s4639_s22 = scalar_lea.hbm %s4683_s8, %s4728_s0 }
 0x2a1   : > { %s2283_s25 = sshll.u32 %s312_s21, 4  ;;  %s2257_s26 = scalar_lea.sflag [#allocation5], %s4533_s17  ;;  %s2284_s25 = int_to_ptr.vmem [resolvable:$true] %s2283_s25 }
 0x2a2   : > { %s3269_s24 = scalar_lea.vmem %s2284_s25, 32  ;;  %s3338_s10 = smov [#allocation4]  }
 0x2a3   : > { %p3270_p13 = scmp.ne.s32.totalorder %s2284_s25, %s3269_s24  ;;  %s3273_s12 = sshll.u32 %s3338_s10, 4  ;;  %s3274_s12 = int_to_ptr.vmem [resolvable:$false] %s3273_s12 }
 0x2a4   : > { %s3275_s13 = scalar_lea.vmem %s3274_s12, 64  ;;  %p3276_p2 = scmp.lt.s32.totalorder %s2284_s25, %s3274_s12 }
 0x2a5   : > { %p3271_p0 = pnand %p3270_p13, %p3422_p5  ;;  %p3277_p3 = scmp.lt.s32.totalorder %s3275_s13, %s3269_s24 }
 0x2a7   : > { %p3272_p1 = pneg %p3271_p0  ;;  %p3278_p4 = por %p3277_p3, %p3276_p2 }
 0x2a9   : > { %p3279_p7 = pnand %p3278_p4, %p3272_p1 }
 0x352   : > { %v2246_v28 = vpop.f32.mrf.mxu1 }
 0x353   : > { %v2247_v61 = vadd.f32 %v2583_v13, %v2246_v28 }
 0x354   : > { %v3191_v21 = vpop.f32.mrf.mxu1 }
 0x355   : > { %2250 = vst [vmem:[%s312_s21] sm:$0x3] %v2247_v61 }
 0x356   : > { %3282 = shalt.err (!%p3279_p7)
}
 0x357   : > { %s3283_s9 = scalar_lea.hbm %s4639_s22, 32  ;;  %s3287_s20 = scalar_lea.hbm %s4683_s8, 64 }
 0x358   : > { %p3284_p8 = scmp.ne.s32.totalorder %s4639_s22, %s3283_s9  ;;  %p3288_p11 = scmp.lt.s32.totalorder %s4639_s22, %s4683_s8 }
 0x359   : > { %p3289_p12 = scmp.lt.s32.totalorder %s3287_s20, %s3283_s9 }
 0x35a   : > { %p3285_p9 = pnand %p3284_p8, %p3422_p5 }
 0x35b   : > { %p3290_p13 = por %p3289_p12, %p3288_p11 }
 0x35c   : > { %p3286_p10 = pneg %p3285_p9 }
 0x35e   : > { %p3291_p0 = pnand %p3290_p13, %p3286_p10 }
 0x360   : > { %3294 = shalt.err (!%p3291_p0)
}
 0x361   : > { %3198 = dma.vmem_to_hbm [thread:$0]  (%p3422_p5), %s2284_s25, 32, %s4639_s22, %s2257_s26  }
 0x362 PF: > { %p3208_p1 = scmp.ge.s32.totalorder %s3333_s30, 2  ;;  %s2295_s18 = sand.u32 1, %s3321_s27  }
 0x363   : > { %s2296_s23 = scalar_lea.sflag [#allocation3], %s2295_s18 }
 0x364   : > { %p3202_p2 = pnand %p3208_p1, %p3426_p6 }
 0x366   : > { %p3203_p3 = pneg %p3202_p2 }
 0x368   : > { %3312 = dma.done.wait (%p3203_p3), %s2296_s23, 32  }
 0x369   : > { %3314 = vsyncadd (%p3203_p3), %s2296_s23, 4294967264  ;;  %s2305_s24 = scalar_lea.sflag [#allocation5], %s2295_s18 }
 0x36a   : > { %3316 = dma.done.wait (%p3203_p3), %s2305_s24, 32  }
 0x36b   : > { %3318 = vsyncadd (%p3203_p3), %s2305_s24, 4294967264  ;;  %p22_p5 = scmp.ge.s32.totalorder %s3409_s11, 4   ;;  %s4729_s27 = smov %s3325_s28 }
 0x36c   : > { %s4730_s28 = smov %s3329_s29  ;;  %s4731_s29 = smov %s3420_s14 }
 0x36d   : > { %s4732_s30 = smov %s3409_s11  ;;  %24 = sbr.rel (!%p22_p5) target bundleno = 7 (0x7), region = 102 }
 0x372   :  { %2310 = vsyncpa [#allocation3], 1 }
 0x373   :  { %2312 = vsyncpa [#allocation3 + $0x1], 1 }
 0x374   :  { %2313 = vsyncpa [#allocation5], 1 }
 0x375   :  { %2315 = vsyncpa [#allocation5 + $0x1], 1 }

</bundles_post_ra>
